<compile_context>
chip_gen: v7x
topology: tpu7x:2x2x1
jax: 0.10.0
libtpu: 0.0.40
codegen_flags: <defaults>
</compile_context>

<pallas_src>
import functools

import jax
import jax.numpy as jnp
from jax import lax
from jax.experimental import pallas as pl
from jax.experimental.pallas import tpu as pltpu

EPS = 1e-5


def _band_weights(w_hwio, W):
    """Fold dw taps + L/R SAME padding of a 3x3 HWIO weight into a K-stacked
    block-banded matrix of shape (3*W*Cin, W*Cout).

    B[dh, p*Cin + ci, q*Cout + co] = w[dh, p - q + 1, ci, co] if |p-q| <= 1
                                     0                        otherwise
    stacked along K in dh order (row h-1, h, h+1), matching the kernel's
    tap concatenation order.
    """
    kh, kw, Ci, Co = w_hwio.shape
    p = jnp.arange(W)                      # source pixel column
    q = jnp.arange(W)                      # output pixel column
    d = jnp.arange(kw)                     # dw tap index
    sel = (p[None, :, None] == q[None, None, :] + d[:, None, None] - 1)
    sel = sel.astype(w_hwio.dtype)                          # (kw, W, W)
    B = jnp.einsum('dpq,hdio->hpiqo', sel, w_hwio)          # (kh, W, Ci, W, Co)
    return B.reshape(kh * W * Ci, W * Co)


def double_conv_kernel(x_ref, wb1_ref, g1_ref, bt1_ref, wb2_ref, g2_ref,
                       bt2_ref, o_ref, *, H, W, Cout):
    # x_ref:   (N*H, W*Cin)        f32 lane-folded input
    # wb*_ref: (3*W*Cin_or_Cout, W*Cout) bf16 K-stacked block-banded weights
    # g*/bt*:  (1, Cout)           f32 BN gamma / beta
    # o_ref:   (N*H, W*Cout)       bf16 lane-folded output
    f32 = jnp.float32
    NH = x_ref.shape[0]
    WCo = W * Cout

    # ---- Hoisted, built exactly once (shared by both convs) ----
    # S sums the W lane-groups of a (1, W*Cout) row into per-channel values.
    lane = lax.broadcasted_iota(jnp.int32, (WCo, Cout), 0) % Cout
    chan = lax.broadcasted_iota(jnp.int32, (WCo, Cout), 1)
    S = jnp.where(lane == chan, 1.0, 0.0).astype(f32)          # (W*Cout, Cout)
    # Per-image top/bottom row masks (implement the vertical SAME padding and
    # stop bleeding across images in the flattened N*H axis).
    row = lax.broadcasted_iota(jnp.int32, (NH, 1), 0) % H
    top = row == 0                                             # (NH, 1) bool
    bot = row == H - 1

    inv_cnt = 1.0 / float(NH * W)                              # 1 / (N*H*W)

    def conv_bn_relu(x_in, wb_ref, g_ref, bt_ref):
        # x_in: (NH, W*Ci) f32
        # ---- 3x3 conv as ONE K-fused matmul ----
        # Row shifts via XLU roll + edge masking (scalar zero, no zero slab).
        up = jnp.where(top, 0.0, pltpu.roll(x_in, 1, axis=0))        # row h-1
        dn = jnp.where(bot, 0.0, pltpu.roll(x_in, NH - 1, axis=0))   # row h+1
        taps = jnp.concatenate([up, x_in, dn], axis=1).astype(jnp.bfloat16)
        acc = jnp.dot(taps, wb_ref[...], preferred_element_type=f32)  # (NH,WCo)

        # ---- BatchNorm (two-pass batch stats) folded into scale/bias + ReLU
        colsum = jnp.sum(acc, axis=0, keepdims=True)                 # (1, WCo)
        mean = jnp.dot(colsum, S, preferred_element_type=f32) * inv_cnt
        mean_l = jnp.tile(mean, (1, W))                              # (1, WCo)
        cen = acc - mean_l                                           # centered
        colsq = jnp.sum(cen * cen, axis=0, keepdims=True)
        var = jnp.dot(colsq, S, preferred_element_type=f32) * inv_cnt
        scale_l = jnp.tile(g_ref[...] * lax.rsqrt(var + EPS), (1, W))
        beta_l = jnp.tile(bt_ref[...], (1, W))
        return jnp.maximum(cen * scale_l + beta_l, 0.0)              # f32

    y1 = conv_bn_relu(x_ref[...], wb1_ref, g1_ref, bt1_ref)
    y2 = conv_bn_relu(y1, wb2_ref, g2_ref, bt2_ref)
    o_ref[...] = y2.astype(o_ref.dtype)                              # bf16 store


def double_conv(x_nchw, w1, g1, b1, w2, g2, b2):
    """x_nchw: (N, Cin, H, W); w*: HWIO (3,3,Cin_or_Cout,Cout). Returns NCHW f32.

    Contract note: conv matmul operands are bf16 with f32 accumulation and the
    kernel store is bf16 (BN/stat math stays f32); this is a deliberate
    precision choice vs. the f32-HIGHEST reference.
    """
    N, Cin, H, W = x_nchw.shape
    Cout = w1.shape[-1]

    # Lane-folded activations (layout plumbing only): (N*H, W*Cin), channel
    # fastest within each lane group.  Kept f32 so in-kernel rolls are f32.
    x2 = jnp.transpose(x_nchw, (0, 2, 3, 1)).reshape(N * H, W * Cin)
    x2 = x2.astype(jnp.float32)
    wb1 = _band_weights(w1.astype(jnp.float32), W).astype(jnp.bfloat16)
    wb2 = _band_weights(w2.astype(jnp.float32), W).astype(jnp.bfloat16)

    kernel = functools.partial(double_conv_kernel, H=H, W=W, Cout=Cout)
    out = pl.pallas_call(
        kernel,
        out_shape=jax.ShapeDtypeStruct((N * H, W * Cout), jnp.bfloat16),
        in_specs=[pl.BlockSpec(memory_space=pltpu.MemorySpace.VMEM)] * 7,
        out_specs=pl.BlockSpec(memory_space=pltpu.MemorySpace.VMEM),
    )(x2, wb1,
      g1.reshape(1, Cout).astype(jnp.float32),
      b1.reshape(1, Cout).astype(jnp.float32),
      wb2,
      g2.reshape(1, Cout).astype(jnp.float32),
      b2.reshape(1, Cout).astype(jnp.float32))

    # Cast back to f32 to preserve the PyTorch module's output dtype; a real
    # U-Net consumer would take the bf16 slab directly.
    out = out.astype(jnp.float32)
    return jnp.transpose(out.reshape(N, H, W, Cout), (0, 3, 1, 2))


def reference_double_conv(x_nchw, w1, g1, b1, w2, g2, b2):
    x = jnp.transpose(x_nchw, (0, 2, 3, 1)).astype(jnp.float32)

    def conv(y, w):
        return jax.lax.conv_general_dilated(
            y, w, window_strides=(1, 1), padding="SAME",
            dimension_numbers=("NHWC", "HWIO", "NHWC"),
            precision=jax.lax.Precision.HIGHEST)

    def bn_relu(y, g, b):
        mean = y.mean(axis=(0, 1, 2))
        var = ((y - mean) ** 2).mean(axis=(0, 1, 2))
        return jnp.maximum((y - mean) * jax.lax.rsqrt(var + EPS) * g + b, 0.0)

    y = bn_relu(conv(x, w1), g1, b1)
    y = bn_relu(conv(y, w2), g2, b2)
    return jnp.transpose(y, (0, 3, 1, 2))


if __name__ == "__main__":
    N, Cin, Cout, H, W = 2, 4, 8, 16, 16
    key = jax.random.PRNGKey(0)
    kx, kw1, kw2 = jax.random.split(key, 3)

    x = jax.random.normal(kx, (N, Cin, H, W), dtype=jnp.float32)
    # Parameter shapes per nn.Conv2d (bias=False, weights given in HWIO) and
    # nn.BatchNorm2d default init (gamma=1, beta=0, training-mode batch stats).
    w1 = 0.1 * jax.random.normal(kw1, (3, 3, Cin, Cout), dtype=jnp.float32)
    w2 = 0.1 * jax.random.normal(kw2, (3, 3, Cout, Cout), dtype=jnp.float32)
    g1 = jnp.ones((Cout,), jnp.float32)
    b1 = jnp.zeros((Cout,), jnp.float32)
    g2 = jnp.ones((Cout,), jnp.float32)
    b2 = jnp.zeros((Cout,), jnp.float32)

    out = double_conv(x, w1, g1, b1, w2, g2, b2)
    out = jax.block_until_ready(out)

    ref = reference_double_conv(x, w1, g1, b1, w2, g2, b2)
    assert out.shape == (N, Cout, H, W), out.shape
    # bf16 matmul operands + bf16 output store -> loose tolerance vs f32 ref.
    assert jnp.allclose(out, ref, atol=5e-2, rtol=5e-2), \
        float(jnp.max(jnp.abs(out - ref)))

    print("KERNEL_OK")
</pallas_src>

<mosaic_0001>
module attributes {stable_mosaic.version = 11 : i64} {
  func.func @double_conv_kernel(%arg0: memref<32x64xf32, #tpu.memory_space<vmem>>, %arg1: memref<192x128xbf16, #tpu.memory_space<vmem>>, %arg2: memref<1x8xf32, #tpu.memory_space<vmem>>, %arg3: memref<1x8xf32, #tpu.memory_space<vmem>>, %arg4: memref<384x128xbf16, #tpu.memory_space<vmem>>, %arg5: memref<1x8xf32, #tpu.memory_space<vmem>>, %arg6: memref<1x8xf32, #tpu.memory_space<vmem>>, %arg7: memref<32x128xbf16, #tpu.memory_space<vmem>>) attributes {dimension_semantics = [], scalar_prefetch = 0 : i64, scratch_operands = 0 : i64, tpu.core_type = #tpu.core_type<tc>} {
    %0 = tpu.iota {dimensions = array<i32: 0>} : vector<128x8xi32>
    %c8_i32 = arith.constant 8 : i32
    %c0_i32 = arith.constant 0 : i32
    %1 = arith.cmpi eq, %c8_i32, %c0_i32 : i32
    %c1_i32 = arith.constant 1 : i32
    %2 = arith.select %1, %c1_i32, %c8_i32 : i32
    %3 = vector.broadcast %2 : i32 to vector<128x8xi32>
    %4 = arith.remsi %0, %3 : vector<128x8xi32>
    %c0_i32_0 = arith.constant 0 : i32
    %5 = vector.broadcast %c0_i32_0 : i32 to vector<128x8xi32>
    %6 = arith.cmpi ne, %4, %5 : vector<128x8xi32>
    %c0_i32_1 = arith.constant 0 : i32
    %7 = vector.broadcast %c0_i32_1 : i32 to vector<128x8xi32>
    %8 = arith.cmpi slt, %4, %7 : vector<128x8xi32>
    %c0_i32_2 = arith.constant 0 : i32
    %9 = arith.cmpi slt, %2, %c0_i32_2 : i32
    %10 = vector.broadcast %9 : i1 to vector<128x8xi1>
    %11 = vector.broadcast %10 : vector<128x8xi1> to vector<128x8xi1>
    %12 = arith.xori %8, %11 : vector<128x8xi1>
    %13 = arith.andi %12, %6 : vector<128x8xi1>
    %14 = vector.broadcast %2 : i32 to vector<128x8xi32>
    %15 = arith.addi %4, %14 : vector<128x8xi32>
    %16 = arith.select %13, %15, %4 : vector<128x8xi1>, vector<128x8xi32>
    %17 = tpu.iota {dimensions = array<i32: 1>} : vector<128x8xi32>
    %18 = arith.cmpi eq, %16, %17 : vector<128x8xi32>
    %cst = arith.constant 1.000000e+00 : f32
    %cst_3 = arith.constant 0.000000e+00 : f32
    %19 = vector.broadcast %cst : f32 to vector<128x8xf32>
    %20 = vector.broadcast %cst_3 : f32 to vector<128x8xf32>
    %21 = arith.select %18, %19, %20 : vector<128x8xi1>, vector<128x8xf32>
    %22 = tpu.iota {dimensions = array<i32: 0>} : vector<32x1xi32>
    %c16_i32 = arith.constant 16 : i32
    %c0_i32_4 = arith.constant 0 : i32
    %23 = arith.cmpi eq, %c16_i32, %c0_i32_4 : i32
    %c1_i32_5 = arith.constant 1 : i32
    %24 = arith.select %23, %c1_i32_5, %c16_i32 : i32
    %25 = vector.broadcast %24 : i32 to vector<32x1xi32>
    %26 = arith.remsi %22, %25 : vector<32x1xi32>
    %c0_i32_6 = arith.constant 0 : i32
    %27 = vector.broadcast %c0_i32_6 : i32 to vector<32x1xi32>
    %28 = arith.cmpi ne, %26, %27 : vector<32x1xi32>
    %c0_i32_7 = arith.constant 0 : i32
    %29 = vector.broadcast %c0_i32_7 : i32 to vector<32x1xi32>
    %30 = arith.cmpi slt, %26, %29 : vector<32x1xi32>
    %c0_i32_8 = arith.constant 0 : i32
    %31 = arith.cmpi slt, %24, %c0_i32_8 : i32
    %32 = vector.broadcast %31 : i1 to vector<32x1xi1>
    %33 = vector.broadcast %32 : vector<32x1xi1> to vector<32x1xi1>
    %34 = arith.xori %30, %33 : vector<32x1xi1>
    %35 = arith.andi %34, %28 : vector<32x1xi1>
    %36 = vector.broadcast %24 : i32 to vector<32x1xi32>
    %37 = arith.addi %26, %36 : vector<32x1xi32>
    %38 = arith.select %35, %37, %26 : vector<32x1xi1>, vector<32x1xi32>
    %c0_i32_9 = arith.constant 0 : i32
    %39 = vector.broadcast %c0_i32_9 : i32 to vector<32x1xi32>
    %40 = arith.cmpi eq, %38, %39 : vector<32x1xi32>
    %c15_i32 = arith.constant 15 : i32
    %41 = vector.broadcast %c15_i32 : i32 to vector<32x1xi32>
    %42 = arith.cmpi eq, %38, %41 : vector<32x1xi32>
    %c0 = arith.constant 0 : index
    %c0_10 = arith.constant 0 : index
    %43 = vector.load %arg0[%c0, %c0_10] : memref<32x64xf32, #tpu.memory_space<vmem>>, vector<32x64xf32>
    %c1_i32_11 = arith.constant 1 : i32
    %44 = tpu.dynamic_rotate %43 by %c1_i32_11 dim 0 : vector<32x64xf32>, i32 -> vector<32x64xf32>
    %cst_12 = arith.constant 0.000000e+00 : f32
    %45 = vector.shape_cast %40 : vector<32x1xi1> to vector<32x1xi1>
    %46 = vector.broadcast %45 : vector<32x1xi1> to vector<32x64xi1>
    %47 = vector.broadcast %cst_12 : f32 to vector<32x64xf32>
    %48 = arith.select %46, %47, %44 : vector<32x64xi1>, vector<32x64xf32>
    %c31_i32 = arith.constant 31 : i32
    %49 = tpu.dynamic_rotate %43 by %c31_i32 dim 0 : vector<32x64xf32>, i32 -> vector<32x64xf32>
    %cst_13 = arith.constant 0.000000e+00 : f32
    %50 = vector.shape_cast %42 : vector<32x1xi1> to vector<32x1xi1>
    %51 = vector.broadcast %50 : vector<32x1xi1> to vector<32x64xi1>
    %52 = vector.broadcast %cst_13 : f32 to vector<32x64xf32>
    %53 = arith.select %51, %52, %49 : vector<32x64xi1>, vector<32x64xf32>
    %54 = tpu.concatenate %48, %43, %53 in 1 : vector<32x64xf32>, vector<32x64xf32>, vector<32x64xf32> -> vector<32x192xf32>
    %55 = arith.truncf %54 : vector<32x192xf32> to vector<32x192xbf16>
    %c0_14 = arith.constant 0 : index
    %c0_15 = arith.constant 0 : index
    %56 = vector.load %arg1[%c0_14, %c0_15] : memref<192x128xbf16, #tpu.memory_space<vmem>>, vector<192x128xbf16>
    %cst_16 = arith.constant dense<0.000000e+00> : vector<32x128xf32>
    %57 = tpu.matmul %55, %56, %cst_16 {dimension_numbers = #tpu.dot_dimension_numbers<[1], [0], [0], [1], [0, 0, 1, 1], [], []>} : vector<32x192xbf16>, vector<192x128xbf16>, vector<32x128xf32> -> vector<32x128xf32>
    %cst_17 = arith.constant dense<0.000000e+00> : vector<128xf32>
    %58 = vector.multi_reduction <add>, %57, %cst_17 [0] : vector<32x128xf32> to vector<128xf32>
    %59 = vector.shape_cast %58 : vector<128xf32> to vector<1x128xf32>
    %cst_18 = arith.constant dense<0.000000e+00> : vector<1x8xf32>
    %60 = tpu.matmul %59, %21, %cst_18 {dimension_numbers = #tpu.dot_dimension_numbers<[1], [0], [0], [1], [0, 0, 1, 1], [], []>} : vector<1x128xf32>, vector<128x8xf32>, vector<1x8xf32> -> vector<1x8xf32>
    %cst_19 = arith.constant 0.001953125 : f32
    %61 = vector.broadcast %cst_19 : f32 to vector<1x8xf32>
    %62 = arith.mulf %60, %61 : vector<1x8xf32>
    %63 = tpu.concatenate %62, %62, %62, %62, %62, %62, %62, %62, %62, %62, %62, %62, %62, %62, %62, %62 in 1 : vector<1x8xf32>, vector<1x8xf32>, vector<1x8xf32>, vector<1x8xf32>, vector<1x8xf32>, vector<1x8xf32>, vector<1x8xf32>, vector<1x8xf32>, vector<1x8xf32>, vector<1x8xf32>, vector<1x8xf32>, vector<1x8xf32>, vector<1x8xf32>, vector<1x8xf32>, vector<1x8xf32>, vector<1x8xf32> -> vector<1x128xf32>
    %64 = vector.broadcast %63 : vector<1x128xf32> to vector<32x128xf32>
    %65 = arith.subf %57, %64 : vector<32x128xf32>
    %66 = arith.mulf %65, %65 : vector<32x128xf32>
    %cst_20 = arith.constant dense<0.000000e+00> : vector<128xf32>
    %67 = vector.multi_reduction <add>, %66, %cst_20 [0] : vector<32x128xf32> to vector<128xf32>
    %68 = vector.shape_cast %67 : vector<128xf32> to vector<1x128xf32>
    %cst_21 = arith.constant dense<0.000000e+00> : vector<1x8xf32>
    %69 = tpu.matmul %68, %21, %cst_21 {dimension_numbers = #tpu.dot_dimension_numbers<[1], [0], [0], [1], [0, 0, 1, 1], [], []>} : vector<1x128xf32>, vector<128x8xf32>, vector<1x8xf32> -> vector<1x8xf32>
    %cst_22 = arith.constant 0.001953125 : f32
    %70 = vector.broadcast %cst_22 : f32 to vector<1x8xf32>
    %71 = arith.mulf %69, %70 : vector<1x8xf32>
    %c0_23 = arith.constant 0 : index
    %c0_24 = arith.constant 0 : index
    %72 = vector.load %arg2[%c0_23, %c0_24] : memref<1x8xf32, #tpu.memory_space<vmem>>, vector<1x8xf32>
    %cst_25 = arith.constant 9.99999974E-6 : f32
    %73 = vector.broadcast %cst_25 : f32 to vector<1x8xf32>
    %74 = arith.addf %71, %73 : vector<1x8xf32>
    %75 = math.rsqrt %74 : vector<1x8xf32>
    %76 = arith.mulf %72, %75 : vector<1x8xf32>
    %77 = tpu.concatenate %76, %76, %76, %76, %76, %76, %76, %76, %76, %76, %76, %76, %76, %76, %76, %76 in 1 : vector<1x8xf32>, vector<1x8xf32>, vector<1x8xf32>, vector<1x8xf32>, vector<1x8xf32>, vector<1x8xf32>, vector<1x8xf32>, vector<1x8xf32>, vector<1x8xf32>, vector<1x8xf32>, vector<1x8xf32>, vector<1x8xf32>, vector<1x8xf32>, vector<1x8xf32>, vector<1x8xf32>, vector<1x8xf32> -> vector<1x128xf32>
    %c0_26 = arith.constant 0 : index
    %c0_27 = arith.constant 0 : index
    %78 = vector.load %arg3[%c0_26, %c0_27] : memref<1x8xf32, #tpu.memory_space<vmem>>, vector<1x8xf32>
    %79 = tpu.concatenate %78, %78, %78, %78, %78, %78, %78, %78, %78, %78, %78, %78, %78, %78, %78, %78 in 1 : vector<1x8xf32>, vector<1x8xf32>, vector<1x8xf32>, vector<1x8xf32>, vector<1x8xf32>, vector<1x8xf32>, vector<1x8xf32>, vector<1x8xf32>, vector<1x8xf32>, vector<1x8xf32>, vector<1x8xf32>, vector<1x8xf32>, vector<1x8xf32>, vector<1x8xf32>, vector<1x8xf32>, vector<1x8xf32> -> vector<1x128xf32>
    %80 = vector.broadcast %77 : vector<1x128xf32> to vector<32x128xf32>
    %81 = arith.mulf %65, %80 : vector<32x128xf32>
    %82 = vector.broadcast %79 : vector<1x128xf32> to vector<32x128xf32>
    %83 = arith.addf %81, %82 : vector<32x128xf32>
    %cst_28 = arith.constant 0.000000e+00 : f32
    %84 = vector.broadcast %cst_28 : f32 to vector<32x128xf32>
    %85 = arith.maximumf %83, %84 : vector<32x128xf32>
    %c1_i32_29 = arith.constant 1 : i32
    %86 = tpu.dynamic_rotate %85 by %c1_i32_29 dim 0 : vector<32x128xf32>, i32 -> vector<32x128xf32>
    %cst_30 = arith.constant 0.000000e+00 : f32
    %87 = vector.shape_cast %40 : vector<32x1xi1> to vector<32x1xi1>
    %88 = vector.broadcast %87 : vector<32x1xi1> to vector<32x128xi1>
    %89 = vector.broadcast %cst_30 : f32 to vector<32x128xf32>
    %90 = arith.select %88, %89, %86 : vector<32x128xi1>, vector<32x128xf32>
    %c31_i32_31 = arith.constant 31 : i32
    %91 = tpu.dynamic_rotate %85 by %c31_i32_31 dim 0 : vector<32x128xf32>, i32 -> vector<32x128xf32>
    %cst_32 = arith.constant 0.000000e+00 : f32
    %92 = vector.shape_cast %42 : vector<32x1xi1> to vector<32x1xi1>
    %93 = vector.broadcast %92 : vector<32x1xi1> to vector<32x128xi1>
    %94 = vector.broadcast %cst_32 : f32 to vector<32x128xf32>
    %95 = arith.select %93, %94, %91 : vector<32x128xi1>, vector<32x128xf32>
    %96 = tpu.concatenate %90, %85, %95 in 1 : vector<32x128xf32>, vector<32x128xf32>, vector<32x128xf32> -> vector<32x384xf32>
    %97 = arith.truncf %96 : vector<32x384xf32> to vector<32x384xbf16>
    %c0_33 = arith.constant 0 : index
    %c0_34 = arith.constant 0 : index
    %98 = vector.load %arg4[%c0_33, %c0_34] : memref<384x128xbf16, #tpu.memory_space<vmem>>, vector<384x128xbf16>
    %cst_35 = arith.constant dense<0.000000e+00> : vector<32x128xf32>
    %99 = tpu.matmul %97, %98, %cst_35 {dimension_numbers = #tpu.dot_dimension_numbers<[1], [0], [0], [1], [0, 0, 1, 1], [], []>} : vector<32x384xbf16>, vector<384x128xbf16>, vector<32x128xf32> -> vector<32x128xf32>
    %cst_36 = arith.constant dense<0.000000e+00> : vector<128xf32>
    %100 = vector.multi_reduction <add>, %99, %cst_36 [0] : vector<32x128xf32> to vector<128xf32>
    %101 = vector.shape_cast %100 : vector<128xf32> to vector<1x128xf32>
    %cst_37 = arith.constant dense<0.000000e+00> : vector<1x8xf32>
    %102 = tpu.matmul %101, %21, %cst_37 {dimension_numbers = #tpu.dot_dimension_numbers<[1], [0], [0], [1], [0, 0, 1, 1], [], []>} : vector<1x128xf32>, vector<128x8xf32>, vector<1x8xf32> -> vector<1x8xf32>
    %cst_38 = arith.constant 0.001953125 : f32
    %103 = vector.broadcast %cst_38 : f32 to vector<1x8xf32>
    %104 = arith.mulf %102, %103 : vector<1x8xf32>
    %105 = tpu.concatenate %104, %104, %104, %104, %104, %104, %104, %104, %104, %104, %104, %104, %104, %104, %104, %104 in 1 : vector<1x8xf32>, vector<1x8xf32>, vector<1x8xf32>, vector<1x8xf32>, vector<1x8xf32>, vector<1x8xf32>, vector<1x8xf32>, vector<1x8xf32>, vector<1x8xf32>, vector<1x8xf32>, vector<1x8xf32>, vector<1x8xf32>, vector<1x8xf32>, vector<1x8xf32>, vector<1x8xf32>, vector<1x8xf32> -> vector<1x128xf32>
    %106 = vector.broadcast %105 : vector<1x128xf32> to vector<32x128xf32>
    %107 = arith.subf %99, %106 : vector<32x128xf32>
    %108 = arith.mulf %107, %107 : vector<32x128xf32>
    %cst_39 = arith.constant dense<0.000000e+00> : vector<128xf32>
    %109 = vector.multi_reduction <add>, %108, %cst_39 [0] : vector<32x128xf32> to vector<128xf32>
    %110 = vector.shape_cast %109 : vector<128xf32> to vector<1x128xf32>
    %cst_40 = arith.constant dense<0.000000e+00> : vector<1x8xf32>
    %111 = tpu.matmul %110, %21, %cst_40 {dimension_numbers = #tpu.dot_dimension_numbers<[1], [0], [0], [1], [0, 0, 1, 1], [], []>} : vector<1x128xf32>, vector<128x8xf32>, vector<1x8xf32> -> vector<1x8xf32>
    %cst_41 = arith.constant 0.001953125 : f32
    %112 = vector.broadcast %cst_41 : f32 to vector<1x8xf32>
    %113 = arith.mulf %111, %112 : vector<1x8xf32>
    %c0_42 = arith.constant 0 : index
    %c0_43 = arith.constant 0 : index
    %114 = vector.load %arg5[%c0_42, %c0_43] : memref<1x8xf32, #tpu.memory_space<vmem>>, vector<1x8xf32>
    %cst_44 = arith.constant 9.99999974E-6 : f32
    %115 = vector.broadcast %cst_44 : f32 to vector<1x8xf32>
    %116 = arith.addf %113, %115 : vector<1x8xf32>
    %117 = math.rsqrt %116 : vector<1x8xf32>
    %118 = arith.mulf %114, %117 : vector<1x8xf32>
    %119 = tpu.concatenate %118, %118, %118, %118, %118, %118, %118, %118, %118, %118, %118, %118, %118, %118, %118, %118 in 1 : vector<1x8xf32>, vector<1x8xf32>, vector<1x8xf32>, vector<1x8xf32>, vector<1x8xf32>, vector<1x8xf32>, vector<1x8xf32>, vector<1x8xf32>, vector<1x8xf32>, vector<1x8xf32>, vector<1x8xf32>, vector<1x8xf32>, vector<1x8xf32>, vector<1x8xf32>, vector<1x8xf32>, vector<1x8xf32> -> vector<1x128xf32>
    %c0_45 = arith.constant 0 : index
    %c0_46 = arith.constant 0 : index
    %120 = vector.load %arg6[%c0_45, %c0_46] : memref<1x8xf32, #tpu.memory_space<vmem>>, vector<1x8xf32>
    %121 = tpu.concatenate %120, %120, %120, %120, %120, %120, %120, %120, %120, %120, %120, %120, %120, %120, %120, %120 in 1 : vector<1x8xf32>, vector<1x8xf32>, vector<1x8xf32>, vector<1x8xf32>, vector<1x8xf32>, vector<1x8xf32>, vector<1x8xf32>, vector<1x8xf32>, vector<1x8xf32>, vector<1x8xf32>, vector<1x8xf32>, vector<1x8xf32>, vector<1x8xf32>, vector<1x8xf32>, vector<1x8xf32>, vector<1x8xf32> -> vector<1x128xf32>
    %122 = vector.broadcast %119 : vector<1x128xf32> to vector<32x128xf32>
    %123 = arith.mulf %107, %122 : vector<32x128xf32>
    %124 = vector.broadcast %121 : vector<1x128xf32> to vector<32x128xf32>
    %125 = arith.addf %123, %124 : vector<32x128xf32>
    %cst_47 = arith.constant 0.000000e+00 : f32
    %126 = vector.broadcast %cst_47 : f32 to vector<32x128xf32>
    %127 = arith.maximumf %125, %126 : vector<32x128xf32>
    %128 = arith.truncf %127 : vector<32x128xf32> to vector<32x128xbf16>
    %c0_48 = arith.constant 0 : index
    %c0_49 = arith.constant 0 : index
    %129 = vector.load %arg7[%c0_48, %c0_49] : memref<32x128xbf16, #tpu.memory_space<vmem>>, vector<32x128xbf16>
    tpu.vector_store %arg7[%c0_48, %c0_49], %128 {strides = array<i32>} : memref<32x128xbf16, #tpu.memory_space<vmem>>, vector<32x128xbf16>,
    return
  }
}

</mosaic_0001>

<bundles_post_ra>
// kernel: tpu_custom_call.1
= control target key start
LH: loop header
LB: loop body
LE: loop exit
PB: predicated region body
PF: predicated region fallthrough
CT: control target
= control target key end

     0   :  { %12 = vsyncpa [#allocation3], 0  ;;  %s3183_s0 = inlined_call_operand.hbm [shape: f32[32,64], index: 0, kind: input, shape index: {}]   ;;  %s3184_s1 = inlined_call_operand.hbm [shape: bf16[192,128], index: 1, kind: input, shape index: {}]   ;;  %s3185_s2 = inlined_call_operand.vmem [shape: f32[1,8], index: 2, kind: input, shape index: {}]   ;;  %s3186_s3 = inlined_call_operand.vmem [shape: f32[1,8], index: 3, kind: input, shape index: {}]   ;;  %s3187_s4 = inlined_call_operand.hbm [shape: bf16[384,128], index: 4, kind: input, shape index: {}]   ;;  %s3188_s5 = inlined_call_operand.vmem [shape: f32[1,8], index: 5, kind: input, shape index: {}]   ;;  %s3189_s6 = inlined_call_operand.vmem [shape: f32[1,8], index: 6, kind: input, shape index: {}]   ;;  %s3190_s7 = inlined_call_operand.hbm [shape: bf16[32,128], index: 7, kind: output, shape index: {}]  }
   0x1   :  { %13 = vsyncpa [#allocation6], 0 }
   0x2   :  { %14 = vsyncpa [#allocation4], 0  ;;  %s2408_s24 = smov [#allocation5]   ;;  %s2314_s28 = scalar_lea.hbm %s3184_s1, 1536 }
   0x3   :  { %s32_s25 = sshll.u32 %s2408_s24, 4  ;;  %p2315_p0 = scmp.ne.s32.totalorder %s3184_s1, %s2314_s28  ;;  %s33_s25 = int_to_ptr.vmem [resolvable:$true] %s32_s25 }
   0x4   :  { %p2318_p1 = scmp.lt.u32.totalorder %s2314_s28, %s3184_s1 }
   0x6   :  { %p2320_p2 = pnand %p2318_p1, %p2315_p0 }
   0x8   :  { %2323 = shalt.err (!%p2320_p2)
}
   0x9   :  { %s2324_s10 = scalar_lea.vmem %s33_s25, 1536  ;;  %p2329_p4 = scmp.lt.s32.totalorder %s33_s25, %s33_s25 }
   0xa   :  { %p2325_p3 = scmp.ne.s32.totalorder %s33_s25, %s2324_s10  ;;  %p2330_p5 = scmp.lt.s32.totalorder %s2324_s10, %s2324_s10 }
   0xc   :  { %p2331_p6 = por %p2330_p5, %p2329_p4 }
   0xe   :  { %p2332_p7 = pnand %p2331_p6, %p2325_p3 }
  0x10   :  { %2335 = shalt.err (!%p2332_p7)
}
  0x11   :  { %s2409_s11 = smov 64   ;;  %s2410_s12 = smov 4  }
  0x12   :  { %38 = dma.hbm_to_vmem [thread:$0]  %s3184_s1, 1536, %s33_s25, [#allocation6], %s2409_s11, %s2409_s11, %s2410_s12  }
  0x13   :  { %s2411_s15 = smov [#allocation2]   ;;  %s2336_s19 = scalar_lea.hbm %s3183_s0, 512 }
  0x14   :  { %s20_s16 = sshll.u32 %s2411_s15, 4  ;;  %p2337_p8 = scmp.ne.s32.totalorder %s3183_s0, %s2336_s19  ;;  %s21_s16 = int_to_ptr.vmem [resolvable:$true] %s20_s16 }
  0x15   :  { %p2340_p9 = scmp.lt.u32.totalorder %s2336_s19, %s3183_s0 }
  0x17   :  { %p2342_p10 = pnand %p2340_p9, %p2337_p8 }
  0x19   :  { %2345 = shalt.err (!%p2342_p10)
}
  0x1a   :  { %s2346_s24 = scalar_lea.vmem %s21_s16, 512  ;;  %p2351_p12 = scmp.lt.s32.totalorder %s21_s16, %s21_s16 }
  0x1b   :  { %p2347_p11 = scmp.ne.s32.totalorder %s21_s16, %s2346_s24  ;;  %p2352_p13 = scmp.lt.s32.totalorder %s2346_s24, %s2346_s24 }
  0x1d   :  { %p2353_p0 = por %p2352_p13, %p2351_p12 }
  0x1f   :  { %p2354_p1 = pnand %p2353_p0, %p2347_p11 }
  0x21   :  { %2357 = shalt.err (!%p2354_p1)
}
  0x22   :  { %s2412_s1 = smov 128   ;;  %s2413_s25 = smov 8  }
  0x23   :  { %26 = dma.hbm_to_vmem [thread:$0]  %s3183_s0, 512, %s21_s16, [#allocation3], %s2412_s1, %s2412_s1, %s2413_s25  }
  0x24   :  { %s2414_s28 = smov [#allocation7]   ;;  %s2358_s9 = scalar_lea.hbm %s3187_s4, 3072 }
  0x25   :  { %s48_s29 = sshll.u32 %s2414_s28, 4  ;;  %p2359_p2 = scmp.ne.s32.totalorder %s3187_s4, %s2358_s9  ;;  %s49_s29 = int_to_ptr.vmem [resolvable:$true] %s48_s29 }
  0x26   :  { %p2362_p3 = scmp.lt.u32.totalorder %s2358_s9, %s3187_s4 }
  0x28   :  { %p2364_p4 = pnand %p2362_p3, %p2359_p2 }
  0x2a   :  { %2367 = shalt.err (!%p2364_p4)
}
  0x2b   :  { %s2368_s17 = scalar_lea.vmem %s49_s29, 3072  ;;  %p2373_p6 = scmp.lt.s32.totalorder %s49_s29, %s49_s29 }
  0x2c   :  { %p2369_p5 = scmp.ne.s32.totalorder %s49_s29, %s2368_s17  ;;  %p2374_p7 = scmp.lt.s32.totalorder %s2368_s17, %s2368_s17 }
  0x2e   :  { %p2375_p8 = por %p2374_p7, %p2373_p6 }
  0x30   :  { %p2376_p9 = pnand %p2375_p8, %p2369_p5 }
  0x32   :  { %2379 = shalt.err (!%p2376_p9)
}
  0x33   :  { %54 = dma.hbm_to_vmem [thread:$0]  %s3187_s4, 3072, %s49_s29, [#allocation6], %s2409_s11, %s2409_s11, %s2410_s12  }
  0x34   :  { %2402 = dma.done.wait [#allocation3], 512  }
  0x35   :  { %2403 = vsyncadd [#allocation3], 4294966784 }
  0x36   :  { %2404 = dma.done.wait [#allocation6], 4608  }
  0x37   :  { %2405 = vsyncadd [#allocation6], 4294962688  ;;  %v69_v0 = vlaneseq  ;;  %v2415_v1 = vmov 0   ;;  %v368_v5 = vld [vmem:[#allocation2] sm:$0xff]  ;;  %v369_v6 = vld [vmem:[#allocation2 + $0x8] sm:$0xff]  ;;  %vm3193_vm3 = vcmask 523264  }
  0x38   :  { %541 = vmatprep.subr.bf16.mxu0 %v2415_v1  ;;  %v370_v7 = vld [vmem:[#allocation2 + $0x10] sm:$0xff]  ;;  %v373_v10 = vrot.slane %v369_v6, 7  ;;  %v394_v11 = vrot.slane %v369_v6, 1  ;;  %v2264_v12 = vpack.i.bf16 %v369_v6, %v368_v5  ;;  %v372_v13 = vrot.slane %v368_v5, 7  ;;  %v371_v14 = vld [vmem:[#allocation2 + $0x18] sm:$0xff]  ;;  %v2274_v18 = vld [vmem:[#allocation5] sm:$0xff]  }
  0x39   :  { %v2519_v2 = vshrl.u32 %v69_v0, 7  ;;  %v393_v15 = vrot.slane %v368_v5, 1  ;;  %v375_v16 = vrot.slane %v371_v14, 7  ;;  %v396_v17 = vrot.slane %v371_v14, 1  ;;  %542 = vmatpush1.bf16.msra.mxu0 %v2274_v18  ;;  %v2275_v23 = vld [vmem:[#allocation5 + $0x8] sm:$0xff]   ;;  %v2276_v35 = vld [vmem:[#allocation5 + $0x10] sm:$0xff]  }
  0x3a   :  { %2265 = vrot.lane.b32.xlu0 %v2264_v12, %s2409_s11  ;;  %v2269_v19 = vpack.i.bf16 %v371_v14, %v370_v7  ;;  %v374_v20 = vrot.slane %v370_v7, 7  ;;  %v395_v21 = vrot.slane %v370_v7, 1  ;;  %543 = vmatprep.subr.bf16.mxu0 %v2415_v1  ;;  %v2277_v39 = vld [vmem:[#allocation5 + $0x18] sm:$0xff]   ;;  %v2416_v40 = vmov 0.0|0.0   ;;  %v2278_v43 = vld [vmem:[#allocation5 + $0x20] sm:$0xff]   ;;  %v2279_v48 = vld [vmem:[#allocation5 + $0x28] sm:$0xff]  }
  0x3b   :  { %v71_v3 = vadd.s32 8, %v2519_v2  ;;  %v73_v4 = vadd.s32 24, %v2519_v2  ;;  %vm3191_vm0 = vcmp.lt.s32.totalorder %v2519_v2, 7  ;;  %vm3192_vm1 = vcmp.lt.s32.totalorder %v2519_v2, 1  ;;  %2141 = vmatprep.subr.bf16.mxu1 %v2416_v40  ;;  %v2280_v51 = vld [vmem:[#allocation5 + $0x30] sm:$0xff]   ;;  %v2281_v52 = vld [vmem:[#allocation5 + $0x38] sm:$0xff]  }
  0x3c   :  { %v2528_v22 = vsel %vm3192_vm1, %v372_v13, %v373_v10  ;;  %v400_v25 = vsel %vm3191_vm0, %v393_v15, %v394_v11  ;;  %v2538_v26 = vsel %vm3192_vm1, %v375_v16, %v372_v13  ;;  %v401_v27 = vsel %vm3191_vm0, %v396_v17, %v393_v15  ;;  %v2282_v53 = vld [vmem:[#allocation5 + $0x40] sm:$0xff]   ;;  %v2283_v54 = vld [vmem:[#allocation5 + $0x48] sm:$0xff]   ;;  %v2284_v55 = vld [vmem:[#allocation5 + $0x50] sm:$0xff]   ;;  %s2420_s4 = smov 24   ;;  %s2421_s18 = smov 40  }
  0x3d   :  { %v323_v8 = vand.u32 15, %v71_v3  ;;  %v337_v9 = vand.u32 15, %v73_v4  ;;  %v399_v28 = vsel %vm3191_vm0, %v394_v11, %v395_v21  ;;  %v398_v29 = vsel %vm3191_vm0, %v395_v21, %v396_v17  ;;  %544 = vmatpush1.bf16.msra.mxu0 %v2275_v23  ;;  %v2285_v56 = vld [vmem:[#allocation5 + $0x58] sm:$0xff]   ;;  %s2422_s19 = smov 16   ;;  %s2423_s20 = smov 56  }
  0x3e   :  { %v2549_v30 = vsel %vm3192_vm1, %v374_v20, %v375_v16  ;;  %v2555_v32 = vsel %vm3192_vm1, %v373_v10, %v374_v20  ;;  %2270 = vrot.lane.b32.xlu0 %v2269_v19, %s2409_s11  ;;  %545 = vmatprep.subr.bf16.mxu0 %v2415_v1  ;;  %v72_v38 = vadd.s32 16, %v2519_v2  ;;  %v90_v41 = vand.u32 7, %v2519_v2  ;;  %s2424_s21 = smov 32   ;;  %s2425_s22 = smov 72  }
  0x3f   :  { %vm2530_vm2 = vcmp.eq.s32.totalorder %v323_v8, 15  ;;  %vm2558_vm4 = vcmp.eq.s32.totalorder %v337_v9, 15  ;;  %v97_v42 = vand.u32 7, %v71_v3  ;;  %v2572_v44 = vand.u32 127, %v69_v0  ;;  %s2426_s23 = smov 48   ;;  %s2427_s24 = smov 88  }
  0x40   :  { %v411_v31 = vsel %vm2530_vm2, 0.0, %v399_v28  ;;  %v413_v36 = vsel %vm2558_vm4, 0.0, %v401_v27  ;;  %v104_v45 = vand.u32 7, %v72_v38  ;;  %v111_v46 = vand.u32 7, %v73_v4  ;;  %s2428_s1 = smov 104   ;;  %s2429_s26 = smov 80  }
  0x41   :  { %v436_v33 = vpack.c.bf16 %v411_v31, %v400_v25  ;;  %v2566_v37 = vpack.c.bf16 %v413_v36, %v398_v29  ;;  %546 = vmatpush1.bf16.msra.mxu0 %v2276_v35  ;;  %vm280_vm5 = vcmp.eq.s32.totalorder %v90_v41, %v2572_v44  ;;  %vm281_vm6 = vcmp.eq.s32.totalorder %v97_v42, %v2572_v44  ;;  %s2430_s29 = smov 120   ;;  %s2431_s30 = smov 96  }
  0x42   :  { %547 = vmatprep.subr.bf16.mxu0 %v2415_v1  ;;  %vm282_vm7 = vcmp.eq.s32.totalorder %v104_v45, %v2572_v44  ;;  %vm283_vm8 = vcmp.eq.s32.totalorder %v111_v46, %v2572_v44  ;;  %vm2579_vm9 = vmpackc.low %vm281_vm6, %vm280_vm5  ;;  %v2417_v49 = vmov 1.0|1.0   ;;  %v316_v57 = vand.u32 15, %v2519_v2  ;;  %s2432_s8 = smov 112  }
  0x43   :  { %1750 = vmatprep.mubr.msk.bf16.mxu0 %vm3193_vm3, %v436_v33  ;;  %2143 = vmatpush3.bf16.msk.msra.mxu1 %vm2579_vm9, %v2417_v49  ;;  %vm2586_vm10 = vmpackc.low %vm283_vm8, %vm282_vm7  ;;  %v330_v59 = vand.u32 15, %v72_v38  ;;  %v74_v12 = vadd.s32 32, %v2519_v2  ;;  %v75_v13 = vadd.s32 40, %v2519_v2  ;;  %v76_v16 = vadd.s32 48, %v2519_v2 }
  0x44   :  { %2144 = vmatprep.subr.bf16.mxu1 %v2416_v40  ;;  %vm2603_vm11 = vcmp.eq.s32.totalorder %v316_v57, 0  ;;  %v77_v17 = vadd.s32 56, %v2519_v2  ;;  %v3234_v18 = vmov 0  ;;  %v78_v21 = vadd.s32 64, %v2519_v2 }
  0x45   :  { %548 = vmatpush1.bf16.msra.mxu0 %v2277_v39  ;;  %v389_v61 = vsel %vm2603_vm11, 0.0, %v2538_v26  ;;  %vm2610_vm12 = vcmp.eq.s32.totalorder %v330_v59, 0  ;;  %v118_v14 = vand.u32 7, %v74_v12  ;;  %v125_v15 = vand.u32 7, %v75_v13 }
  0x46   :  { %549 = vmatprep.subr.bf16.mxu0 %v2415_v1  ;;  %v391_v6 = vsel %vm2610_vm12, 0.0, %v2555_v32  ;;  %v132_v19 = vand.u32 7, %v76_v16  ;;  %v139_v20 = vand.u32 7, %v77_v17  ;;  %v3236_v23 = vmov 0 }
  0x47   :  { %2146 = vmatpush3.bf16.msk.msra.mxu1 %vm2586_vm10, %v2417_v49  ;;  %vm284_vm13 = vcmp.eq.s32.totalorder %v118_v14, %v2572_v44  ;;  %vm285_vm14 = vcmp.eq.s32.totalorder %v125_v15, %v2572_v44  ;;  %v146_v25 = vand.u32 7, %v78_v21  ;;  %v80_v27 = vadd.s32 80, %v2519_v2 }
  0x48   :  { %2147 = vmatprep.subr.bf16.mxu1 %v2416_v40  ;;  %vm2631_vm15 = vmpackc.low %vm285_vm14, %vm284_vm13  ;;  %vm286_vm5 = vcmp.eq.s32.totalorder %v132_v19, %v2572_v44  ;;  %vm287_vm6 = vcmp.eq.s32.totalorder %v139_v20, %v2572_v44  ;;  %v81_v28 = vadd.s32 88, %v2519_v2  ;;  %v3238_v29 = vmov 0 }
  0x49   :  { %550 = vmatpush1.bf16.msra.mxu0 %v2278_v43  ;;  %v3235_v18 = vsel %vm2631_vm15, 4294967295, %v3234_v18  ;;  %vm2643_vm7 = vmpackc.low %vm287_vm6, %vm286_vm5  ;;  %vm288_vm8 = vcmp.eq.s32.totalorder %v146_v25, %v2572_v44  ;;  %v82_v32 = vadd.s32 96, %v2519_v2  ;;  %v83_v33 = vadd.s32 104, %v2519_v2 }
  0x4a   :  { %551 = vmatprep.subr.bf16.mxu0 %v2415_v1  ;;  %v3237_v23 = vsel %vm2643_vm7, 4294967295, %v3236_v23  ;;  %v167_v31 = vand.u32 7, %v81_v28  ;;  %v3240_v35 = vmov 0  ;;  %v84_v38 = vadd.s32 112, %v2519_v2 }
  0x4b   :  { %2149 = vmatpush3.bf16.msk.msra.mxu1 %vm2631_vm15, %v2417_v49  ;;  %v174_v36 = vand.u32 7, %v82_v32  ;;  %v85_v39 = vadd.s32 120, %v2519_v2  ;;  %v3242_v41 = vmov 0  ;;  %v2419_v45 = vmov 0.0  }
  0x4c   :  { %2150 = vmatprep.subr.bf16.mxu1 %v2416_v40  ;;  %vm291_vm6 = vcmp.eq.s32.totalorder %v167_v31, %v2572_v44  ;;  %v188_v42 = vand.u32 7, %v84_v38  ;;  %v3244_v46 = vmov 0 }
  0x4d   :  { %552 = vmatpush1.bf16.msra.mxu0 %v2279_v48  ;;  %v195_v43 = vand.u32 7, %v85_v39 }
  0x4e   :  { %553 = vmatprep.subr.bf16.mxu0 %v2415_v1 }
  0x4f   :  { %2152 = vmatpush3.bf16.msk.msra.mxu1 %vm2643_vm7, %v2417_v49  ;;  %vm295_vm1 = vcmp.eq.s32.totalorder %v195_v43, %v2572_v44 }
  0x50   :  { %2153 = vmatprep.subr.bf16.mxu1 %v2416_v40 }
  0x51   :  { %554 = vmatpush1.bf16.msra.mxu0 %v2280_v51 }
  0x52   :  { %555 = vmatprep.subr.bf16.mxu0 %v2415_v1 }
  0x55   :  { %556 = vmatpush1.bf16.msra.mxu0 %v2281_v52 }
  0x56   :  { %557 = vmatprep.subr.bf16.mxu0 %v2415_v1 }
  0x59   :  { %558 = vmatpush1.bf16.msra.mxu0 %v2282_v53 }
  0x5a   :  { %559 = vmatprep.subr.bf16.mxu0 %v2415_v1 }
  0x5d   :  { %560 = vmatpush1.bf16.msra.mxu0 %v2283_v54 }
  0x5e   :  { %561 = vmatprep.subr.bf16.mxu0 %v2415_v1 }
  0x61   :  { %562 = vmatpush1.bf16.msra.mxu0 %v2284_v55 }
  0x62   :  { %563 = vmatprep.subr.bf16.mxu0 %v2415_v1 }
  0x65   :  { %564 = vmatpush1.bf16.msra.mxu0 %v2285_v56 }
  0xac   :  { %v2266_v60 = vpop.permute.xlu0 %2265 }
  0xad   :  { %v2268_v62 = vunpack.i.h.bf16 %v2266_v60  ;;  %v2267_v63 = vunpack.i.l.bf16 %v2266_v60 }
  0xaf   :  { %v431_v1 = vsel %vm3193_vm3, %v389_v61, %v2267_v63  ;;  %v432_v3 = vsel %vm3193_vm3, %v2528_v22, %v2268_v62  ;;  %v79_v22 = vadd.s32 72, %v2519_v2 }
  0xb0   :  { %v435_v4 = vpack.c.bf16 %v432_v3, %v431_v1  ;;  %v2271_v5 = vpop.permute.xlu0 %2270 }
  0xb1   :  { %v2273_v7 = vunpack.i.h.bf16 %v2271_v5  ;;  %v2272_v8 = vunpack.i.l.bf16 %v2271_v5  ;;  %v153_v26 = vand.u32 7, %v79_v22 }
  0xb2   :  { %574 = vmatmul.mubr.bf16.vlgmr.msra.gmra.mrb[0].mxu0 %v435_v4 }
  0xb3   :  { %1751 = vmatprep.mubr.msk.bf16.mxu0 %vm3193_vm3, %v2566_v37  ;;  %v433_v9 = vsel %vm3193_vm3, %v391_v6, %v2272_v8  ;;  %v434_v10 = vsel %vm3193_vm3, %v2549_v30, %v2273_v7  ;;  %vm289_vm13 = vcmp.eq.s32.totalorder %v153_v26, %v2572_v44  ;;  %v160_v30 = vand.u32 7, %v80_v27  ;;  %v2759_v8 = vld [vmem:[%s3186_s3] sm:$0x1] }
  0xb4   :  { %v437_v11 = vpack.c.bf16 %v434_v10, %v433_v9  ;;  %vm2655_vm14 = vmpackc.low %vm289_vm13, %vm288_vm8  ;;  %v181_v37 = vand.u32 7, %v83_v33  ;;  %vm292_vm13 = vcmp.eq.s32.totalorder %v174_v36, %v2572_v44  ;;  %vm3194_vm3 = vmmov 0  }
  0xb5   :  { %v3239_v29 = vsel %vm2655_vm14, 4294967295, %v3238_v29  ;;  %2155 = vmatpush3.bf16.msk.msra.mxu1 %vm2655_vm14, %v2417_v49  ;;  %vm290_vm5 = vcmp.eq.s32.totalorder %v160_v30, %v2572_v44  ;;  %2013 = vmatprep.mubr.msk.f32.mxu1 %vm3194_vm3, %v2419_v45  ;;  %v2762_v9 = vsub.s32 0, %v2519_v2 }
  0xb6   :  { %2156 = vmatprep.subr.bf16.mxu1 %v2416_v40  ;;  %vm2667_vm8 = vmpackc.low %vm291_vm6, %vm290_vm5  ;;  %vm293_vm0 = vcmp.eq.s32.totalorder %v181_v37, %v2572_v44  ;;  %vm294_vm6 = vcmp.eq.s32.totalorder %v188_v42, %v2572_v44 }
  0xb7   :  { %v3241_v35 = vsel %vm2667_vm8, 4294967295, %v3240_v35  ;;  %vm2679_vm5 = vmpackc.low %vm293_vm0, %vm292_vm13  ;;  %v2768_v10 = vrot.slane %v2759_v8, %v2762_v9  ;;  %vm3201_vm13 = vcmask 130048  }
  0xb8   :  { %v3243_v41 = vsel %vm2679_vm5, 4294967295, %v3242_v41  ;;  %vm2691_vm0 = vmpackc.low %vm295_vm1, %vm294_vm6  ;;  %vm3200_vm1 = vcmask 64512   ;;  %vm3204_vm6 = vcmask 195584  }
  0xb9   :  { %2158 = vmatpush3.bf16.msk.msra.mxu1 %vm2667_vm8, %v2417_v49  ;;  %v3245_v46 = vsel %vm2691_vm0, 4294967295, %v3244_v46 }
  0xba   :  { %582 = vmatmul.mubr.bf16.gmra.mrb[4].mxu0 %v437_v11  ;;  %2159 = vmatprep.subr.bf16.mxu1 %v2416_v40 }
  0xbd   :  { %2161 = vmatpush3.bf16.msk.msra.mxu1 %vm2679_vm5, %v2417_v49 }
  0xbe   :  { %2162 = vmatprep.subr.bf16.mxu1 %v2416_v40 }
  0xc1   :  { %2164 = vmatpush3.bf16.msk.msra.mxu1 %vm2691_vm0, %v2417_v49 }
  0xc2   :  { %2165 = vmatprep.subr.bf16.mxu1 %v2416_v40 }
 0x185   :  { %v2699_v48 = vpop.f32.mrb[0].mxu0 }
 0x186   :  { %v577_v51 = vpop.f32.mrb[1].mxu0 }
 0x187   :  { %v2701_v52 = vpop.f32.mrb[2].mxu0 }
 0x188   :  { %v590_v44 = vadd.f32 %v2701_v52, %v2699_v48  ;;  %v580_v53 = vpop.f32.mrb[3].mxu0 }
 0x18d   :  { %v2705_v54 = vpop.f32.mrb[4].mxu0 }
 0x18e   :  { %v591_v55 = vadd.f32 %v590_v44, %v2705_v54  ;;  %v585_v56 = vpop.f32.mrb[5].mxu0 }
 0x18f   :  { %v2708_v57 = vpop.f32.mrb[6].mxu0 }
 0x190   :  { %v592_v59 = vadd.f32 %v591_v55, %v2708_v57  ;;  %v588_v60 = vpop.f32.mrb[7].mxu0 }
 0x192   :  { %v593_v61 = vrot.slane %v592_v59, 4 }
 0x194   :  { %v594_v62 = vadd.f32 %v593_v61, %v592_v59 }
 0x196   :  { %v595_v63 = vrot.slane %v594_v62, 2 }
 0x198   :  { %v596_v1 = vadd.f32 %v595_v63, %v594_v62 }
 0x19a   :  { %v597_v3 = vrot.slane %v596_v1, 1 }
 0x19c   :  { %v598_v4 = vadd.f32 %v597_v3, %v596_v1 }
 0x19e   :  { %2014 = vmatmul.mubr.f32.vlgmr.msra.gmra.mrb[0].mxu1 %v598_v4 }
 0x19f   :  { %2167 = vmatpush3.bf16.msk.msra.mxu1 %vm2579_vm9, %v2417_v49  ;;  %2048 = vmatprep.mubr.msk.f32.mxu1 %vm3194_vm3, %v2419_v45  ;;  %vm3205_vm3 = vcmask 261120  }
 0x1a0   :  { %2168 = vmatprep.subr.bf16.mxu1 %v2416_v40 }
 0x1a3   :  { %2170 = vmatpush3.bf16.msk.msra.mxu1 %vm2586_vm10, %v2417_v49 }
 0x1a4   :  { %2171 = vmatprep.subr.bf16.mxu1 %v2416_v40 }
 0x1a7   :  { %2173 = vmatpush3.bf16.msk.msra.mxu1 %vm2631_vm15, %v2417_v49 }
 0x1a8   :  { %2174 = vmatprep.subr.bf16.mxu1 %v2416_v40 }
 0x1ab   :  { %2176 = vmatpush3.bf16.msk.msra.mxu1 %vm2643_vm7, %v2417_v49  ;;  %vm3256_vm7 = vcmask 588800  }
 0x1ac   :  { %2177 = vmatprep.subr.bf16.mxu1 %v2416_v40  ;;  %vm3260_vm15 = vmmov %vm3256_vm7 }
 0x1af   :  { %2179 = vmatpush3.bf16.msk.msra.mxu1 %vm2655_vm14, %v2417_v49  ;;  %vm3214_vm14 = vcmask 785408  }
 0x1b0   :  { %2180 = vmatprep.subr.bf16.mxu1 %v2416_v40 }
 0x1b3   :  { %2182 = vmatpush3.bf16.msk.msra.mxu1 %vm2667_vm8, %v2417_v49  ;;  %vm3217_vm8 = vcmask 588800  }
 0x1b4   :  { %2183 = vmatprep.subr.bf16.mxu1 %v2416_v40 }
 0x1b7   :  { %2185 = vmatpush3.bf16.msk.msra.mxu1 %vm2679_vm5, %v2417_v49  ;;  %vm3209_vm5 = vcmask 392192  }
 0x1b8   :  { %2186 = vmatprep.subr.bf16.mxu1 %v2416_v40 }
 0x1bb   :  { %2188 = vmatpush3.bf16.msk.msra.mxu1 %vm2691_vm0, %v2417_v49  ;;  %vm3210_vm0 = vcmask 326656  }
 0x271   :  { %v665_v5 = vpop.f32.mrb[0].mxu1 }
 0x272   :  { %v669_v6 = vmul.f32 0.001953125, %v665_v5  ;;  %v2015_v7 = vpop.f32.mrb[1].mxu1 }
 0x274   :  { %677 = vrot.lane.b32.xlu0 %v669_v6, %s2420_s4  ;;  %671 = vrot.lane.b32.xlu1 %v669_v6, %s2413_s25 }
 0x278   :  { %683 = vrot.lane.b32.xlu0 %v669_v6, %s2421_s18  ;;  %674 = vrot.lane.b32.xlu1 %v669_v6, %s2422_s19 }
 0x27c   :  { %689 = vrot.lane.b32.xlu0 %v669_v6, %s2423_s20  ;;  %680 = vrot.lane.b32.xlu1 %v669_v6, %s2424_s21 }
 0x280   :  { %695 = vrot.lane.b32.xlu0 %v669_v6, %s2425_s22  ;;  %686 = vrot.lane.b32.xlu1 %v669_v6, %s2426_s23 }
 0x284   :  { %701 = vrot.lane.b32.xlu0 %v669_v6, %s2427_s24  ;;  %692 = vrot.lane.b32.xlu1 %v669_v6, %s2409_s11 }
 0x288   :  { %707 = vrot.lane.b32.xlu0 %v669_v6, %s2428_s1  ;;  %698 = vrot.lane.b32.xlu1 %v669_v6, %s2429_s26 }
 0x28c   :  { %713 = vrot.lane.b32.xlu0 %v669_v6, %s2430_s29  ;;  %704 = vrot.lane.b32.xlu1 %v669_v6, %s2431_s30 }
 0x290   :  { %710 = vrot.lane.b32.xlu1 %v669_v6, %s2432_s8  ;;  %912 = vrot.lane.b32.xlu0 %v2768_v10, %s2413_s25 }
 0x294   :  { %915 = vrot.lane.b32.xlu0 %v2768_v10, %s2422_s19 }
 0x298   :  { %918 = vrot.lane.b32.xlu0 %v2768_v10, %s2420_s4 }
 0x29c   :  { %921 = vrot.lane.b32.xlu0 %v2768_v10, %s2424_s21 }
 0x2a0   :  { %924 = vrot.lane.b32.xlu0 %v2768_v10, %s2421_s18 }
 0x2a4   :  { %927 = vrot.lane.b32.xlu0 %v2768_v10, %s2426_s23 }
 0x2a8   :  { %930 = vrot.lane.b32.xlu0 %v2768_v10, %s2423_s20 }
 0x2ac   :  { %933 = vrot.lane.b32.xlu0 %v2768_v10, %s2409_s11 }
 0x2b0   :  { %936 = vrot.lane.b32.xlu0 %v2768_v10, %s2425_s22 }
 0x2b4   :  { %939 = vrot.lane.b32.xlu0 %v2768_v10, %s2429_s26 }
 0x2e6   :  { %v678_v11 = vpop.permute.xlu0 %677  ;;  %v672_v12 = vpop.permute.xlu1 %671 }
 0x2e7   :  { %v717_v13 = vsel %vm3200_vm1, %v669_v6, %v672_v12  ;;  %vm3208_vm1 = vcmask 457728  }
 0x2ea   :  { %v684_v14 = vpop.permute.xlu0 %683  ;;  %v675_v15 = vpop.permute.xlu1 %674 }
 0x2eb   :  { %v719_v16 = vsel %vm3201_vm13, %v717_v13, %v675_v15  ;;  %vm3246_vm13 = vcmask 523264  }
 0x2ec   :  { %v721_v19 = vsel %vm3204_vm6, %v719_v16, %v678_v11  ;;  %vm3216_vm6 = vcmask 654336  }
 0x2ee   :  { %v690_v17 = vpop.permute.xlu0 %689  ;;  %v681_v20 = vpop.permute.xlu1 %680 }
 0x2ef   :  { %v723_v21 = vsel %vm3205_vm3, %v721_v19, %v681_v20  ;;  %vm3215_vm3 = vcmask 719872   ;;  %v837_v19 = vld [vmem:[%s3185_s2] sm:$0x1] }
 0x2f0   :  { %v725_v25 = vsel %vm3210_vm0, %v723_v21, %v684_v14  ;;  %vm3211_vm0 = vcmask 982016  }
 0x2f2   :  { %v696_v22 = vpop.permute.xlu0 %695  ;;  %v687_v26 = vpop.permute.xlu1 %686 }
 0x2f3   :  { %v727_v27 = vsel %vm3209_vm5, %v725_v25, %v687_v26  ;;  %vm3212_vm5 = vcmask 916480   ;;  %v2286_v25 = vld [vmem:[#allocation7 + $0x40] sm:$0xff]  }
 0x2f4   :  { %v729_v28 = vsel %vm3208_vm1, %v727_v27, %v690_v17  ;;  %vm3213_vm1 = vcmask 850944   ;;  %v2287_v26 = vld [vmem:[#allocation7] sm:$0xff]   ;;  %1909 = vmatprep.subr.bf16.mxu0 %v2286_v25 }
 0x2f5   :  { %v2288_v27 = vld [vmem:[#allocation7 + $0x80] sm:$0xff]   ;;  %1910 = vmatpush3.bf16.msra.mxu0 %v2287_v26 }
 0x2f6   :  { %v693_v30 = vpop.permute.xlu1 %692  ;;  %v702_v31 = vpop.permute.xlu0 %701  ;;  %2051 = vmatprep.subr.bf16.mxu1 %v2288_v27 }
 0x2f7   :  { %v730_v32 = vsel %vm3246_vm13, %v729_v28, %v693_v30  ;;  %v2289_v28 = vld [vmem:[#allocation7 + $0x48] sm:$0xff]   ;;  %vm3247_vm13 = vcmask 64512  }
 0x2f8   :  { %v732_v33 = vsel %vm3217_vm8, %v730_v32, %v696_v22  ;;  %v2290_v30 = vld [vmem:[#allocation7 + $0x8] sm:$0xff]   ;;  %1911 = vmatprep.subr.bf16.mxu0 %v2289_v28  ;;  %v2292_v32 = vld [vmem:[#allocation7 + $0x50] sm:$0xff]   ;;  %vm3255_vm8 = vcmask 195584  }
 0x2f9   :  { %1912 = vmatpush3.bf16.msra.mxu0 %v2290_v30 }
 0x2fa   :  { %v699_v36 = vpop.permute.xlu1 %698  ;;  %v708_v38 = vpop.permute.xlu0 %707  ;;  %1913 = vmatprep.subr.bf16.mxu0 %v2292_v32 }
 0x2fb   :  { %v734_v37 = vsel %vm3216_vm6, %v732_v33, %v699_v36  ;;  %v2293_v33 = vld [vmem:[#allocation7 + $0x10] sm:$0xff]   ;;  %vm3253_vm6 = vcmask 457728  }
 0x2fc   :  { %v736_v39 = vsel %vm3215_vm3, %v734_v37, %v702_v31  ;;  %v2291_v31 = vld [vmem:[#allocation7 + $0x88] sm:$0xff]   ;;  %v2294_v36 = vld [vmem:[#allocation7 + $0x90] sm:$0xff]   ;;  %v2295_v37 = vld [vmem:[#allocation7 + $0x58] sm:$0xff]   ;;  %vm3252_vm3 = vcmask 392192  }
 0x2fd   :  { %1914 = vmatpush3.bf16.msra.mxu0 %v2293_v33 }
 0x2fe   :  { %v705_v42 = vpop.permute.xlu1 %704  ;;  %v714_v53 = vpop.permute.xlu0 %713  ;;  %1915 = vmatprep.subr.bf16.mxu0 %v2295_v37 }
 0x2ff   :  { %v738_v43 = vsel %vm3214_vm14, %v736_v39, %v705_v42  ;;  %v2297_v39 = vld [vmem:[#allocation7 + $0x98] sm:$0xff]   ;;  %v2298_v42 = vld [vmem:[#allocation7 + $0x60] sm:$0xff]   ;;  %vm3251_vm14 = vcmask 326656  }
 0x300   :  { %v740_v51 = vsel %vm3213_vm1, %v738_v43, %v708_v38  ;;  %v2296_v38 = vld [vmem:[#allocation7 + $0x18] sm:$0xff]   ;;  %v2299_v43 = vld [vmem:[#allocation7 + $0x20] sm:$0xff]   ;;  %vm3250_vm1 = vcmask 261120  }
 0x301   :  { %1916 = vmatpush3.bf16.msra.mxu0 %v2296_v38 }
 0x302   :  { %v711_v44 = vpop.permute.xlu1 %710  ;;  %1917 = vmatprep.subr.bf16.mxu0 %v2298_v42 }
 0x303   :  { %v742_v55 = vsel %vm3212_vm5, %v740_v51, %v711_v44  ;;  %v2300_v51 = vld [vmem:[#allocation7 + $0xa0] sm:$0xff]   ;;  %v2301_v44 = vld [vmem:[#allocation7 + $0x68] sm:$0xff]   ;;  %vm3249_vm5 = vcmask 195584  }
 0x304   :  { %v744_v56 = vsel %vm3211_vm0, %v742_v55, %v714_v53  ;;  %v2302_v53 = vld [vmem:[#allocation7 + $0x28] sm:$0xff]   ;;  %vm3248_vm0 = vcmask 130048  }
 0x305   :  { %v748_v59 = vrot.slane %v744_v56, %v2762_v9  ;;  %1918 = vmatpush3.bf16.msra.mxu0 %v2299_v43  ;;  %v2303_v55 = vld [vmem:[#allocation7 + $0xa8] sm:$0xff]   ;;  %v2304_v56 = vld [vmem:[#allocation7 + $0x70] sm:$0xff]  }
 0x306   :  { %1919 = vmatprep.subr.bf16.mxu0 %v2301_v44 }
 0x307   :  { %v2808_v60 = vsub.f32 %v2699_v48, %v748_v59  ;;  %v2811_v61 = vsub.f32 %v2701_v52, %v748_v59  ;;  %v2814_v62 = vsub.f32 %v2705_v54, %v748_v59  ;;  %v2817_v63 = vsub.f32 %v2708_v57, %v748_v59  ;;  %v2305_v59 = vld [vmem:[#allocation7 + $0x30] sm:$0xff]  }
 0x309   :  { %v753_v1 = vmul.f32 %v2808_v60, %v2808_v60  ;;  %v754_v3 = vmul.f32 %v2811_v61, %v2811_v61  ;;  %v755_v4 = vmul.f32 %v2814_v62, %v2814_v62  ;;  %v756_v52 = vmul.f32 %v2817_v63, %v2817_v63  ;;  %1920 = vmatpush3.bf16.msra.mxu0 %v2302_v53 }
 0x30a   :  { %1921 = vmatprep.subr.bf16.mxu0 %v2304_v56 }
 0x30b   :  { %v757_v48 = vadd.f32 %v754_v3, %v753_v1  ;;  %v2306_v1 = vld [vmem:[#allocation7 + $0xb0] sm:$0xff]   ;;  %v2307_v3 = vld [vmem:[#allocation7 + $0x78] sm:$0xff]  }
 0x30d   :  { %v758_v5 = vadd.f32 %v757_v48, %v755_v4  ;;  %1922 = vmatpush3.bf16.msra.mxu0 %v2305_v59  ;;  %v2308_v4 = vld [vmem:[#allocation7 + $0x38] sm:$0xff]  }
 0x30e   :  { %1923 = vmatprep.subr.bf16.mxu0 %v2307_v3  ;;  %v2309_v48 = vld [vmem:[#allocation7 + $0xb8] sm:$0xff]  }
 0x30f   :  { %v759_v6 = vadd.f32 %v758_v5, %v756_v52  ;;  %v913_v52 = vpop.permute.xlu0 %912 }
 0x311   :  { %v760_v54 = vrot.slane %v759_v6, 4  ;;  %1924 = vmatpush3.bf16.msra.mxu0 %v2308_v4 }
 0x312   :  { %2189 = vmatprep.subr.bf16.mxu0 %v2416_v40 }
 0x313   :  { %v761_v7 = vadd.f32 %v760_v54, %v759_v6  ;;  %v916_v5 = vpop.permute.xlu0 %915 }
 0x315   :  { %v762_v11 = vrot.slane %v761_v7, 2 }
 0x317   :  { %v763_v57 = vadd.f32 %v762_v11, %v761_v7  ;;  %v919_v6 = vpop.permute.xlu0 %918 }
 0x319   :  { %v764_v12 = vrot.slane %v763_v57, 1 }
 0x31b   :  { %v765_v13 = vadd.f32 %v764_v12, %v763_v57  ;;  %v922_v54 = vpop.permute.xlu0 %921 }
 0x31d   :  { %2049 = vmatmul.mubr.f32.vlgmr.msra.gmra.mrb[2].mxu1 %v765_v13 }
 0x31e   :  { %2052 = vmatpush3.bf16.msra.mxu1 %v2288_v27 }
 0x31f   :  { %2053 = vmatprep.subr.bf16.mxu1 %v2291_v31  ;;  %v925_v7 = vpop.permute.xlu0 %924 }
 0x322   :  { %2054 = vmatpush3.bf16.msra.mxu1 %v2291_v31 }
 0x323   :  { %2055 = vmatprep.subr.bf16.mxu1 %v2294_v36  ;;  %v928_v57 = vpop.permute.xlu0 %927 }
 0x326   :  { %2056 = vmatpush3.bf16.msra.mxu1 %v2294_v36 }
 0x327   :  { %2057 = vmatprep.subr.bf16.mxu1 %v2297_v39 }
 0x32a   :  { %2058 = vmatpush3.bf16.msra.mxu1 %v2297_v39 }
 0x32b   :  { %2059 = vmatprep.subr.bf16.mxu1 %v2300_v51 }
 0x32e   :  { %2060 = vmatpush3.bf16.msra.mxu1 %v2300_v51 }
 0x32f   :  { %2061 = vmatprep.subr.bf16.mxu1 %v2303_v55 }
 0x332   :  { %2062 = vmatpush3.bf16.msra.mxu1 %v2303_v55 }
 0x333   :  { %2063 = vmatprep.subr.bf16.mxu1 %v2306_v1 }
 0x336   :  { %2064 = vmatpush3.bf16.msra.mxu1 %v2306_v1 }
 0x337   :  { %2065 = vmatprep.subr.bf16.mxu1 %v2309_v48 }
 0x33a   :  { %2066 = vmatpush3.bf16.msra.mxu1 %v2309_v48 }
 0x33b   :  { %2213 = vmatprep.subr.bf16.mxu1 %v2416_v40 }
 0x3f0   :  { %v832_v14 = vpop.f32.mrb[2].mxu1 }
 0x3f1   :  { %v836_v15 = vmul.f32 0.001953125, %v832_v14  ;;  %v2050_v16 = vpop.f32.mrb[3].mxu1  ;;  %v931_v14 = vpop.permute.xlu0 %930 }
 0x3f3   :  { %v838_v17 = vadd.f32 1e-05, %v836_v15 }
 0x3f5   :  { %2310 = vrsqrt.f32 %v838_v17  ;;  %v934_v16 = vpop.permute.xlu0 %933 }
 0x3ff   :  { %v2311_v20 = vpop.eup %2310 }
 0x400   :  { %v2830_v21 = vmul.f32 %v2311_v20, %v837_v19  ;;  %v957_v19 = vsel %vm3247_vm13, %v2759_v8, %v913_v52 }
 0x402   :  { %v2834_v22 = vrot.slane %v2830_v21, %v2762_v9 }
 0x404   :  { %849 = vrot.lane.b32.xlu0 %v2834_v22, %s2422_s19  ;;  %846 = vrot.lane.b32.xlu1 %v2834_v22, %s2413_s25 }
 0x408   :  { %852 = vrot.lane.b32.xlu1 %v2834_v22, %s2420_s4  ;;  %942 = vrot.lane.b32.xlu0 %v2768_v10, %s2427_s24 }
 0x40c   :  { %855 = vrot.lane.b32.xlu1 %v2834_v22, %s2424_s21  ;;  %945 = vrot.lane.b32.xlu0 %v2768_v10, %s2431_s30 }
 0x410   :  { %858 = vrot.lane.b32.xlu1 %v2834_v22, %s2421_s18  ;;  %948 = vrot.lane.b32.xlu0 %v2768_v10, %s2428_s1 }
 0x414   :  { %861 = vrot.lane.b32.xlu1 %v2834_v22, %s2426_s23  ;;  %954 = vrot.lane.b32.xlu0 %v2768_v10, %s2430_s29 }
 0x418   :  { %864 = vrot.lane.b32.xlu1 %v2834_v22, %s2423_s20 }
 0x41c   :  { %867 = vrot.lane.b32.xlu1 %v2834_v22, %s2409_s11 }
 0x420   :  { %870 = vrot.lane.b32.xlu1 %v2834_v22, %s2425_s22 }
 0x424   :  { %873 = vrot.lane.b32.xlu1 %v2834_v22, %s2429_s26 }
 0x428   :  { %876 = vrot.lane.b32.xlu1 %v2834_v22, %s2427_s24 }
 0x42c   :  { %879 = vrot.lane.b32.xlu1 %v2834_v22, %s2431_s30 }
 0x430   :  { %882 = vrot.lane.b32.xlu1 %v2834_v22, %s2428_s1 }
 0x434   :  { %885 = vrot.lane.b32.xlu1 %v2834_v22, %s2432_s8 }
 0x438   :  { %888 = vrot.lane.b32.xlu1 %v2834_v22, %s2430_s29  ;;  %v958_v22 = vsel %vm3248_vm0, %v957_v19, %v916_v5 }
 0x439   :  { %v959_v26 = vsel %vm3249_vm5, %v958_v22, %v919_v6  ;;  %vm3254_vm5 = vcmask 523264  }
 0x43a   :  { %v960_v30 = vsel %vm3250_vm1, %v959_v26, %v922_v54 }
 0x43b   :  { %v961_v31 = vsel %vm3251_vm14, %v960_v30, %v925_v7 }
 0x43c   :  { %951 = vrot.lane.b32.xlu1 %v2768_v10, %s2432_s8  ;;  %v937_v10 = vpop.permute.xlu0 %936  ;;  %v962_v36 = vsel %vm3252_vm3, %v961_v31, %v928_v57 }
 0x43d   :  { %v963_v38 = vsel %vm3253_vm6, %v962_v36, %v931_v14 }
 0x43e   :  { %v964_v51 = vsel %vm3254_vm5, %v963_v38, %v934_v16 }
 0x43f   :  { %v965_v56 = vsel %vm3256_vm7, %v964_v51, %v937_v10  ;;  %vm3264_vm7 = vcmask 785408  }
 0x440   :  { %v940_v27 = vpop.permute.xlu0 %939 }
 0x476   :  { %v847_v11 = vpop.permute.xlu1 %846  ;;  %v850_v33 = vpop.permute.xlu0 %849 }
 0x477   :  { %v891_v8 = vsel %vm3247_vm13, %v2830_v21, %v847_v11  ;;  %vm3257_vm13 = vmmov %vm3253_vm6 }
 0x478   :  { %v892_v42 = vsel %vm3248_vm0, %v891_v8, %v850_v33  ;;  %vm3258_vm6 = vmmov %vm3254_vm5  ;;  %vm3259_vm0 = vcmask 654336  }
 0x479   :  { %v966_v48 = vsel %vm3259_vm0, %v965_v56, %v940_v27  ;;  %vm3261_vm5 = vmmov %vm3259_vm0 }
 0x47a   :  { %v853_v12 = vpop.permute.xlu1 %852  ;;  %v943_v39 = vpop.permute.xlu0 %942 }
 0x47b   :  { %v893_v44 = vsel %vm3255_vm8, %v892_v42, %v853_v12  ;;  %vm3262_vm8 = vcmask 719872  }
 0x47e   :  { %v856_v13 = vpop.permute.xlu1 %855  ;;  %v946_v21 = vpop.permute.xlu0 %945 }
 0x47f   :  { %v894_v53 = vsel %vm3250_vm1, %v893_v44, %v856_v13  ;;  %vm3263_vm1 = vmmov %vm3262_vm8 }
 0x480   :  { %v967_v7 = vsel %vm3263_vm1, %v966_v48, %v943_v39  ;;  %vm1816_vm1 = vmneg %vm2530_vm2  ;;  %vm3274_vm2 = vcmp.lt.s32.totalorder %v2519_v2, 7 }
 0x482   :  { %v859_v15 = vpop.permute.xlu1 %858  ;;  %v949_v57 = vpop.permute.xlu0 %948 }
 0x483   :  { %v895_v55 = vsel %vm3251_vm14, %v894_v53, %v859_v15  ;;  %vm3265_vm14 = vcmask 850944  }
 0x486   :  { %v862_v17 = vpop.permute.xlu1 %861  ;;  %v955_v19 = vpop.permute.xlu0 %954 }
 0x487   :  { %v896_v59 = vsel %vm3252_vm3, %v895_v55, %v862_v17  ;;  %vm3266_vm3 = vcmask 916480  }
 0x488   :  { %vm3270_vm0 = vmmov %vm3266_vm3 }
 0x48a   :  { %v865_v20 = vpop.permute.xlu1 %864 }
 0x48b   :  { %v897_v3 = vsel %vm3257_vm13, %v896_v59, %v865_v20  ;;  %vm3267_vm13 = vmmov %vm3264_vm7 }
 0x48c   :  { %v968_v15 = vsel %vm3267_vm13, %v967_v7, %v946_v21 }
 0x48e   :  { %v868_v25 = vpop.permute.xlu1 %867 }
 0x48f   :  { %v898_v4 = vsel %vm3258_vm6, %v897_v3, %v868_v25  ;;  %vm3268_vm6 = vcmask 982016  }
 0x492   :  { %v871_v28 = vpop.permute.xlu1 %870 }
 0x493   :  { %v899_v52 = vsel %vm3260_vm15, %v898_v4, %v871_v28  ;;  %vm3269_vm15 = vmmov %vm3265_vm14 }
 0x494   :  { %v969_v20 = vsel %vm3269_vm15, %v968_v15, %v949_v57 }
 0x496   :  { %v874_v32 = vpop.permute.xlu1 %873 }
 0x497   :  { %v900_v5 = vsel %vm3261_vm5, %v899_v52, %v874_v32  ;;  %vm3271_vm5 = vmmov %vm3268_vm6 }
 0x49a   :  { %v877_v37 = vpop.permute.xlu1 %876 }
 0x49b   :  { %v901_v54 = vsel %vm3262_vm8, %v900_v5, %v877_v37  ;;  %vm1808_vm8 = vmneg %vm2603_vm11  ;;  %vm2433_vm11 = vmmov 1  }
 0x49c   :  { %vm1809_vm13 = vmpackc.low %vm2433_vm11, %vm1808_vm8 }
 0x49d   :  { %vm1817_vm15 = vmpackc.low %vm1816_vm1, %vm2433_vm11 }
 0x49e   :  { %v880_v43 = vpop.permute.xlu1 %879  ;;  %vm1812_vm8 = vmneg %vm2610_vm12  ;;  %vm3280_vm12 = vmmov 0  }
 0x49f   :  { %v902_v11 = vsel %vm3264_vm7, %v901_v54, %v880_v43  ;;  %vm1820_vm7 = vmneg %vm2558_vm4 }
 0x4a0   :  { %vm3276_vm4 = vmmov %vm3274_vm2 }
 0x4a2   :  { %v883_v1 = vpop.permute.xlu1 %882 }
 0x4a3   :  { %v903_v12 = vsel %vm3265_vm14, %v902_v11, %v883_v1  ;;  %vm3272_vm14 = vcmp.lt.s32.totalorder %v2519_v2, 1 }
 0x4a6   :  { %v886_v6 = vpop.permute.xlu1 %885 }
 0x4a7   :  { %v904_v13 = vsel %vm3266_vm3, %v903_v12, %v886_v6  ;;  %vm3273_vm3 = vmmov %vm3272_vm14 }
 0x4a8   :  { %vm3278_vm1 = vmmov %vm3273_vm3 }
 0x4aa   :  { %v889_v14 = vpop.permute.xlu1 %888 }
 0x4ab   :  { %v905_v16 = vsel %vm3268_vm6, %v904_v13, %v889_v14  ;;  %vm3275_vm6 = vmmov %vm3274_vm2 }
 0x4ac   :  { %v975_v17 = vrot.slane %v905_v16, %v2762_v9 }
 0x4ae   :  { %v952_v10 = vpop.permute.xlu1 %951  ;;  %v976_v25 = vmul.f32 %v975_v17, %v2808_v60  ;;  %v977_v27 = vmul.f32 %v975_v17, %v2811_v61  ;;  %v978_v28 = vmul.f32 %v975_v17, %v2814_v62  ;;  %v979_v30 = vmul.f32 %v975_v17, %v2817_v63 }
 0x4af   :  { %v970_v22 = vsel %vm3270_vm0, %v969_v20, %v952_v10  ;;  %vm3277_vm0 = vmmov %vm3274_vm2 }
 0x4b0   :  { %v971_v26 = vsel %vm3271_vm5, %v970_v22, %v955_v19  ;;  %vm1821_vm5 = vmpackc.low %vm1820_vm7, %vm2433_vm11 }
 0x4b1   :  { %v983_v31 = vrot.slane %v971_v26, %v2762_v9  ;;  %vm1813_vm7 = vmpackc.low %vm2433_vm11, %vm1812_vm8  ;;  %vm3284_vm11 = vnez %v3241_v35  ;;  %vm3292_vm8 = vcmask 392192  }
 0x4b3   :  { %v986_v32 = vadd.f32 %v983_v31, %v978_v28  ;;  %v987_v33 = vadd.f32 %v983_v31, %v979_v30  ;;  %v984_v36 = vadd.f32 %v983_v31, %v976_v25  ;;  %v985_v37 = vadd.f32 %v983_v31, %v977_v27  ;;  %v3039_v31 = vld [vmem:[%s3189_s6] sm:$0x1] }
 0x4b5   :  { %v990_v8 = vmax.f32 %v986_v32, 0.0  ;;  %v991_v38 = vmax.f32 %v987_v33, 0.0  ;;  %v988_v39 = vmax.f32 %v984_v36, 0.0  ;;  %v989_v42 = vmax.f32 %v985_v37, 0.0 }
 0x4b6   :  { %v3043_v32 = vrot.slane %v3039_v31, %v2762_v9 }
 0x4b7   :  { %v995_v60 = vrot.slane %v991_v38, 7  ;;  %v1007_v43 = vrot.slane %v991_v38, 1  ;;  %v992_v61 = vrot.slane %v988_v39, 7  ;;  %v993_v51 = vrot.slane %v989_v42, 7 }
 0x4b8   :  { %v1017_v62 = vpack.c.bf16 %v989_v42, %v988_v39  ;;  %v1004_v63 = vrot.slane %v988_v39, 1  ;;  %v1005_v44 = vrot.slane %v989_v42, 1  ;;  %v1006_v53 = vrot.slane %v990_v8, 1 }
 0x4b9   :  { %v998_v55 = vsel %vm3272_vm14, %v992_v61, %v993_v51  ;;  %v999_v58 = vsel %vm3273_vm3, %v995_v60, %v992_v61  ;;  %v1020_v21 = vpack.c.bf16 %v991_v38, %v990_v8  ;;  %v994_v4 = vrot.slane %v990_v8, 7  ;;  %vm3279_vm14 = vmmov %vm3278_vm1 }
 0x4ba   :  { %1246 = vmatprep.mubr.bf16.mxu0 %v1017_v62  ;;  %v1810_v56 = vpack.c.bf16 %v998_v55, %v999_v58  ;;  %v1009_v24 = vsel %vm3274_vm2, %v1005_v44, %v1006_v53  ;;  %v1010_v59 = vsel %vm3275_vm6, %v1004_v63, %v1005_v44  ;;  %v1008_v34 = vsel %vm3276_vm4, %v1006_v53, %v1007_v43 }
 0x4bb   :  { %v1818_v1 = vpack.c.bf16 %v1009_v24, %v1010_v59  ;;  %v1011_v3 = vsel %vm3277_vm0, %v1007_v43, %v1004_v63  ;;  %v996_v52 = vsel %vm3278_vm1, %v994_v4, %v995_v60  ;;  %v997_v5 = vsel %vm3279_vm14, %v993_v51, %v994_v4 }
 0x4bc   :  { %1811 = vmatmul.mubr.msk.bf16.vlgmr.msra.gmra.mrb[8].mxu0 %vm1809_vm13, %v1810_v56  ;;  %v1822_v48 = vpack.c.bf16 %v1011_v3, %v1008_v34  ;;  %v1814_v0 = vpack.c.bf16 %v996_v52, %v997_v5  ;;  %vm3283_vm3 = vnez %v3239_v29  ;;  %vm3285_vm13 = vnez %v3243_v41 }
 0x4bd   :  { %2067 = vmatprep.mubr.msk.bf16.mxu1 %vm1817_vm15, %v1818_v1  ;;  %1254 = vmatprep.mubr.bf16.mxu0 %v1020_v21  ;;  %vm3286_vm2 = vnez %v3245_v46  ;;  %vm3287_vm6 = vcmask 64512   ;;  %vm3288_vm15 = vcmask 130048   ;;  %vm3289_vm4 = vcmask 195584  }
 0x4be   :  { %2068 = vmatmul.mubr.msk.bf16.vlgmr.msra.gmra.mrb[4].mxu1 %vm1821_vm5, %v1822_v48  ;;  %2191 = vmatpush3.bf16.msk.msra.mxu0 %vm2579_vm9, %v2417_v49  ;;  %vm3290_vm0 = vcmask 261120   ;;  %vm3291_vm5 = vcmask 326656   ;;  %vm3293_vm1 = vcmask 457728   ;;  %vm3294_vm14 = vcmask 523264  }
 0x4bf   :  { %2192 = vmatprep.subr.bf16.mxu0 %v2416_v40  ;;  %2215 = vmatpush3.bf16.msk.msra.mxu1 %vm2579_vm9, %v2417_v49  ;;  %vm3281_vm9 = vnez %v3235_v18 }
 0x4c0   :  { %2216 = vmatprep.subr.bf16.mxu1 %v2416_v40  ;;  %2138 = vmatprep.mubr.msk.f32.mxu1 %vm3280_vm12, %v2419_v45 }
 0x4c2   :  { %2194 = vmatpush3.bf16.msk.msra.mxu0 %vm2586_vm10, %v2417_v49 }
 0x4c3   :  { %2195 = vmatprep.subr.bf16.mxu0 %v2416_v40  ;;  %2218 = vmatpush3.bf16.msk.msra.mxu1 %vm2586_vm10, %v2417_v49  ;;  %vm3282_vm10 = vnez %v3237_v23 }
 0x4c4   :  { %1815 = vmatmul.mubr.msk.bf16.gmra.mrb[12].mxu0 %vm1813_vm7, %v1814_v0  ;;  %2219 = vmatprep.subr.bf16.mxu1 %v2416_v40  ;;  %vm3296_vm7 = vcmask 654336  }
 0x4c5   :  { %2103 = vmatprep.mubr.msk.f32.mxu0 %vm3280_vm12, %v2419_v45  ;;  %vm3295_vm12 = vcmask 588800  }
 0x4c6   :  { %2197 = vmatpush3.bf16.msk.msra.mxu0 %vm3281_vm9, %v2417_v49 }
 0x4c7   :  { %2198 = vmatprep.subr.bf16.mxu0 %v2416_v40  ;;  %2221 = vmatpush3.bf16.msk.msra.mxu1 %vm3281_vm9, %v2417_v49  ;;  %vm3297_vm9 = vcmask 719872  }
 0x4c8   :  { %2222 = vmatprep.subr.bf16.mxu1 %v2416_v40 }
 0x4ca   :  { %2200 = vmatpush3.bf16.msk.msra.mxu0 %vm3282_vm10, %v2417_v49 }
 0x4cb   :  { %2201 = vmatprep.subr.bf16.mxu0 %v2416_v40  ;;  %2224 = vmatpush3.bf16.msk.msra.mxu1 %vm3282_vm10, %v2417_v49  ;;  %vm3298_vm10 = vcmask 785408  }
 0x4cc   :  { %2225 = vmatprep.subr.bf16.mxu1 %v2416_v40 }
 0x4ce   :  { %2203 = vmatpush3.bf16.msk.msra.mxu0 %vm3283_vm3, %v2417_v49 }
 0x4cf   :  { %2204 = vmatprep.subr.bf16.mxu0 %v2416_v40  ;;  %2227 = vmatpush3.bf16.msk.msra.mxu1 %vm3283_vm3, %v2417_v49  ;;  %vm3299_vm3 = vcmask 850944  }
 0x4d0   :  { %2228 = vmatprep.subr.bf16.mxu1 %v2416_v40 }
 0x4d2   :  { %2206 = vmatpush3.bf16.msk.msra.mxu0 %vm3284_vm11, %v2417_v49 }
 0x4d3   :  { %2207 = vmatprep.subr.bf16.mxu0 %v2416_v40  ;;  %2230 = vmatpush3.bf16.msk.msra.mxu1 %vm3284_vm11, %v2417_v49  ;;  %vm3300_vm11 = vcmask 916480  }
 0x4d4   :  { %2231 = vmatprep.subr.bf16.mxu1 %v2416_v40 }
 0x4d6   :  { %2209 = vmatpush3.bf16.msk.msra.mxu0 %vm3285_vm13, %v2417_v49 }
 0x4d7   :  { %2210 = vmatprep.subr.bf16.mxu0 %v2416_v40  ;;  %2233 = vmatpush3.bf16.msk.msra.mxu1 %vm3285_vm13, %v2417_v49  ;;  %vm3301_vm13 = vcmask 982016  }
 0x4d8   :  { %2234 = vmatprep.subr.bf16.mxu1 %v2416_v40 }
 0x4da   :  { %2212 = vmatpush3.bf16.msk.msra.mxu0 %vm3286_vm2, %v2417_v49 }
 0x4db   :  { %2236 = vmatpush3.bf16.msk.msra.mxu1 %vm3286_vm2, %v2417_v49  ;;  %vm3302_vm2 = vmmov %vm3287_vm6 }
 0x58f   :  { %v1925_v2 = vpop.f32.mrb[8].mxu0 }
 0x590   :  { %v1926_v47 = vpop.f32.mrb[9].mxu0 }
 0x591   :  { %v1927_v50 = vadd.f32 %v1926_v47, %v1925_v2  ;;  %v2069_v18 = vpop.f32.mrb[4].mxu1  ;;  %v1928_v23 = vpop.f32.mrb[10].mxu0 }
 0x592   :  { %v1297_v29 = vpop.f32.mrb[5].mxu1  ;;  %v1929_v35 = vpop.f32.mrb[11].mxu0 }
 0x593   :  { %v3010_v45 = vadd.f32 %v1927_v50, %v1297_v29  ;;  %v1930_v41 = vadd.f32 %v1929_v35, %v1928_v23  ;;  %v2070_v6 = vpop.f32.mrb[6].mxu1 }
 0x594   :  { %v1300_v40 = vpop.f32.mrb[7].mxu1 }
 0x595   :  { %v3012_v54 = vadd.f32 %v1930_v41, %v1300_v40 }
 0x597   :  { %v1931_v7 = vpop.f32.mrb[12].mxu0  ;;  %v1312_v49 = vadd.f32 %v3012_v54, %v3010_v45 }
 0x598   :  { %v1932_v11 = vpop.f32.mrb[13].mxu0 }
 0x599   :  { %v1933_v57 = vadd.f32 %v1932_v11, %v1931_v7  ;;  %v1934_v12 = vpop.f32.mrb[14].mxu0 }
 0x59a   :  { %v1935_v46 = vpop.f32.mrb[15].mxu0 }
 0x59b   :  { %v3016_v13 = vadd.f32 %v2069_v18, %v1933_v57  ;;  %v1936_v14 = vadd.f32 %v1935_v46, %v1934_v12 }
 0x59d   :  { %v1313_v15 = vadd.f32 %v1312_v49, %v3016_v13  ;;  %v3019_v16 = vadd.f32 %v2070_v6, %v1936_v14 }
 0x59f   :  { %v1314_v17 = vadd.f32 %v1313_v15, %v3019_v16 }
 0x5a1   :  { %v1315_v19 = vrot.slane %v1314_v17, 4 }
 0x5a3   :  { %v1316_v20 = vadd.f32 %v1315_v19, %v1314_v17  ;;  %v1545_v19 = vld [vmem:[%s3188_s5] sm:$0x1]  ;;  %s2434_s5 = smov [#allocation8]  }
 0x5a5   :  { %v1317_v10 = vrot.slane %v1316_v20, 2 }
 0x5a7   :  { %v1318_v22 = vadd.f32 %v1317_v10, %v1316_v20 }
 0x5a9   :  { %v1319_v25 = vrot.slane %v1318_v22, 1 }
 0x5ab   :  { %v1320_v26 = vadd.f32 %v1319_v25, %v1318_v22 }
 0x5ad   :  { %2104 = vmatmul.mubr.f32.vlgmr.msra.gmra.mrb[16].mxu0 %v1320_v26 }
 0x680   :  { %v1387_v27 = vpop.f32.mrb[16].mxu0 }
 0x681   :  { %v1391_v28 = vmul.f32 0.001953125, %v1387_v27  ;;  %v2105_v30 = vpop.f32.mrb[17].mxu0 }
 0x683   :  { %1396 = vrot.lane.b32.xlu0 %v1391_v28, %s2422_s19  ;;  %1393 = vrot.lane.b32.xlu1 %v1391_v28, %s2413_s25 }
 0x687   :  { %1402 = vrot.lane.b32.xlu0 %v1391_v28, %s2424_s21  ;;  %1399 = vrot.lane.b32.xlu1 %v1391_v28, %s2420_s4 }
 0x68b   :  { %1408 = vrot.lane.b32.xlu0 %v1391_v28, %s2426_s23  ;;  %1405 = vrot.lane.b32.xlu1 %v1391_v28, %s2421_s18 }
 0x68f   :  { %1414 = vrot.lane.b32.xlu0 %v1391_v28, %s2409_s11  ;;  %1411 = vrot.lane.b32.xlu1 %v1391_v28, %s2423_s20 }
 0x693   :  { %1420 = vrot.lane.b32.xlu0 %v1391_v28, %s2429_s26  ;;  %1417 = vrot.lane.b32.xlu1 %v1391_v28, %s2425_s22 }
 0x697   :  { %1426 = vrot.lane.b32.xlu0 %v1391_v28, %s2431_s30  ;;  %1423 = vrot.lane.b32.xlu1 %v1391_v28, %s2427_s24 }
 0x69b   :  { %1432 = vrot.lane.b32.xlu0 %v1391_v28, %s2432_s8  ;;  %1429 = vrot.lane.b32.xlu1 %v1391_v28, %s2428_s1 }
 0x69f   :  { %1435 = vrot.lane.b32.xlu1 %v1391_v28, %s2430_s29 }
 0x6a3   :  { %1620 = vrot.lane.b32.xlu1 %v3043_v32, %s2413_s25 }
 0x6a7   :  { %1623 = vrot.lane.b32.xlu1 %v3043_v32, %s2422_s19 }
 0x6ab   :  { %1626 = vrot.lane.b32.xlu1 %v3043_v32, %s2420_s4 }
 0x6af   :  { %1629 = vrot.lane.b32.xlu1 %v3043_v32, %s2424_s21 }
 0x6b3   :  { %1632 = vrot.lane.b32.xlu1 %v3043_v32, %s2421_s18 }
 0x6b7   :  { %1635 = vrot.lane.b32.xlu1 %v3043_v32, %s2426_s23 }
 0x6bb   :  { %1638 = vrot.lane.b32.xlu1 %v3043_v32, %s2423_s20 }
 0x6bf   :  { %1641 = vrot.lane.b32.xlu1 %v3043_v32, %s2409_s11 }
 0x6c3   :  { %1644 = vrot.lane.b32.xlu1 %v3043_v32, %s2425_s22 }
 0x6c7   :  { %1647 = vrot.lane.b32.xlu1 %v3043_v32, %s2429_s26 }
 0x6f5   :  { %v1397_v33 = vpop.permute.xlu0 %1396  ;;  %v1394_v36 = vpop.permute.xlu1 %1393 }
 0x6f6   :  { %v1438_v37 = vsel %vm3287_vm6, %v1391_v28, %v1394_v36  ;;  %vm3303_vm6 = vmmov %vm3288_vm15 }
 0x6f7   :  { %v1439_v38 = vsel %vm3288_vm15, %v1438_v37, %v1397_v33  ;;  %vm3304_vm15 = vmmov %vm3289_vm4 }
 0x6f9   :  { %v1403_v8 = vpop.permute.xlu0 %1402  ;;  %v1400_v39 = vpop.permute.xlu1 %1399 }
 0x6fa   :  { %v1440_v42 = vsel %vm3289_vm4, %v1439_v38, %v1400_v39  ;;  %vm3305_vm4 = vmmov %vm3290_vm0 }
 0x6fb   :  { %v1441_v43 = vsel %vm3290_vm0, %v1440_v42, %v1403_v8  ;;  %vm3306_vm0 = vmmov %vm3291_vm5 }
 0x6fd   :  { %v1409_v60 = vpop.permute.xlu0 %1408  ;;  %v1406_v61 = vpop.permute.xlu1 %1405 }
 0x6fe   :  { %v1442_v51 = vsel %vm3291_vm5, %v1441_v43, %v1406_v61  ;;  %vm3307_vm5 = vmmov %vm3292_vm8 }
 0x6ff   :  { %v1443_v63 = vsel %vm3292_vm8, %v1442_v51, %v1409_v60  ;;  %vm3308_vm8 = vmmov %vm3302_vm2 }
 0x701   :  { %v1415_v62 = vpop.permute.xlu0 %1414  ;;  %v1412_v44 = vpop.permute.xlu1 %1411 }
 0x702   :  { %v1444_v53 = vsel %vm3293_vm1, %v1443_v63, %v1412_v44 }
 0x703   :  { %v1445_v58 = vsel %vm3294_vm14, %v1444_v53, %v1415_v62  ;;  %vm3309_vm14 = vmmov %vm3303_vm6 }
 0x705   :  { %v1421_v55 = vpop.permute.xlu0 %1420  ;;  %v1418_v56 = vpop.permute.xlu1 %1417 }
 0x706   :  { %v1446_v24 = vsel %vm3295_vm12, %v1445_v58, %v1418_v56  ;;  %vm3310_vm12 = vcmask 523264  }
 0x707   :  { %v1447_v34 = vsel %vm3296_vm7, %v1446_v24, %v1421_v55  ;;  %vm3311_vm7 = vmmov %vm3304_vm15 }
 0x709   :  { %v1427_v59 = vpop.permute.xlu0 %1426  ;;  %v1424_v1 = vpop.permute.xlu1 %1423 }
 0x70a   :  { %v1448_v21 = vsel %vm3297_vm9, %v1447_v34, %v1424_v1  ;;  %vm3312_vm9 = vmmov %vm3305_vm4 }
 0x70b   :  { %v1449_v3 = vsel %vm3298_vm10, %v1448_v21, %v1427_v59  ;;  %vm3313_vm10 = vmmov %vm3306_vm0 }
 0x70d   :  { %v1430_v4 = vpop.permute.xlu1 %1429  ;;  %v1433_v48 = vpop.permute.xlu0 %1432 }
 0x70e   :  { %v1450_v52 = vsel %vm3299_vm3, %v1449_v3, %v1430_v4  ;;  %vm3314_vm3 = vcmask 588800  }
 0x70f   :  { %v1451_v5 = vsel %vm3300_vm11, %v1450_v52, %v1433_v48  ;;  %vm3315_vm11 = vmmov %vm3307_vm5 }
 0x711   :  { %v1436_v0 = vpop.permute.xlu1 %1435 }
 0x712   :  { %v1452_v2 = vsel %vm3301_vm13, %v1451_v5, %v1436_v0  ;;  %vm3316_vm13 = vmmov %vm3293_vm1 }
 0x713   :  { %v1456_v47 = vrot.slane %v1452_v2, %v2762_v9 }
 0x715   :  { %v3083_v50 = vsub.f32 %v3010_v45, %v1456_v47  ;;  %v3086_v18 = vsub.f32 %v3012_v54, %v1456_v47  ;;  %v3089_v23 = vsub.f32 %v3016_v13, %v1456_v47  ;;  %v3092_v29 = vsub.f32 %v3019_v16, %v1456_v47  ;;  %v1621_v25 = vpop.permute.xlu1 %1620 }
 0x716   :  { %v1665_v43 = vsel %vm3302_vm2, %v3039_v31, %v1621_v25  ;;  %vm3317_vm2 = vmmov %vm3310_vm12 }
 0x717   :  { %v1461_v35 = vmul.f32 %v3083_v50, %v3083_v50  ;;  %v1462_v41 = vmul.f32 %v3086_v18, %v3086_v18  ;;  %v1463_v6 = vmul.f32 %v3089_v23, %v3089_v23  ;;  %v1464_v40 = vmul.f32 %v3092_v29, %v3092_v29 }
 0x719   :  { %v1465_v45 = vadd.f32 %v1462_v41, %v1461_v35  ;;  %v1624_v26 = vpop.permute.xlu1 %1623 }
 0x71b   :  { %v1466_v54 = vadd.f32 %v1465_v45, %v1463_v6 }
 0x71d   :  { %v1467_v7 = vadd.f32 %v1466_v54, %v1464_v40  ;;  %v1627_v27 = vpop.permute.xlu1 %1626 }
 0x71f   :  { %v1468_v11 = vrot.slane %v1467_v7, 4 }
 0x721   :  { %v1469_v57 = vadd.f32 %v1468_v11, %v1467_v7  ;;  %v1630_v28 = vpop.permute.xlu1 %1629 }
 0x723   :  { %v1470_v12 = vrot.slane %v1469_v57, 2 }
 0x725   :  { %v1471_v46 = vadd.f32 %v1470_v12, %v1469_v57  ;;  %v1633_v30 = vpop.permute.xlu1 %1632 }
 0x727   :  { %v1472_v49 = vrot.slane %v1471_v46, 1 }
 0x729   :  { %v1473_v13 = vadd.f32 %v1472_v49, %v1471_v46  ;;  %v1636_v36 = vpop.permute.xlu1 %1635 }
 0x72b   :  { %2139 = vmatmul.mubr.f32.vlgmr.msra.gmra.mrb[8].mxu1 %v1473_v13 }
 0x72d   :  { %v1639_v38 = vpop.permute.xlu1 %1638 }
 0x731   :  { %v1642_v42 = vpop.permute.xlu1 %1641 }
 0x735   :  { %v1645_v51 = vpop.permute.xlu1 %1644 }
 0x739   :  { %v1648_v44 = vpop.permute.xlu1 %1647 }
 0x7fe   :  { %v1540_v14 = vpop.f32.mrb[8].mxu1 }
 0x7ff   :  { %v1544_v15 = vmul.f32 0.001953125, %v1540_v14  ;;  %v2140_v16 = vpop.f32.mrb[9].mxu1 }
 0x801   :  { %v1546_v17 = vadd.f32 1e-05, %v1544_v15 }
 0x803   :  { %2312 = vrsqrt.f32 %v1546_v17 }
 0x80d   :  { %v2313_v20 = vpop.eup %2312 }
 0x80e   :  { %v1548_v10 = vmul.f32 %v2313_v20, %v1545_v19 }
 0x810   :  { %v1553_v22 = vrot.slane %v1548_v10, %v2762_v9 }
 0x812   :  { %1557 = vrot.lane.b32.xlu1 %v1553_v22, %s2422_s19  ;;  %1554 = vrot.lane.b32.xlu0 %v1553_v22, %s2413_s25  ;;  %s1725_s25 = sshll.u32 %s2434_s5, 4  ;;  %s1726_s25 = int_to_ptr.vmem [resolvable:$true] %s1725_s25 }
 0x813   :  { %s2380_s14 = scalar_lea.vmem %s1726_s25, 256  ;;  %p2385_p11 = scmp.lt.s32.totalorder %s1726_s25, %s1726_s25 }
 0x814   :  { %p2381_p10 = scmp.ne.s32.totalorder %s1726_s25, %s2380_s14  ;;  %p2386_p12 = scmp.lt.s32.totalorder %s2380_s14, %s2380_s14 }
 0x816   :  { %1560 = vrot.lane.b32.xlu0 %v1553_v22, %s2420_s4  ;;  %1650 = vrot.lane.b32.xlu1 %v3043_v32, %s2427_s24  ;;  %p2387_p13 = por %p2386_p12, %p2385_p11 }
 0x818   :  { %p2388_p0 = pnand %p2387_p13, %p2381_p10 }
 0x81a   :  { %1563 = vrot.lane.b32.xlu0 %v1553_v22, %s2424_s21  ;;  %1653 = vrot.lane.b32.xlu1 %v3043_v32, %s2431_s30 }
 0x81e   :  { %1566 = vrot.lane.b32.xlu0 %v1553_v22, %s2421_s18  ;;  %1656 = vrot.lane.b32.xlu1 %v3043_v32, %s2428_s1 }
 0x822   :  { %1569 = vrot.lane.b32.xlu0 %v1553_v22, %s2426_s23  ;;  %1662 = vrot.lane.b32.xlu1 %v3043_v32, %s2430_s29 }
 0x826   :  { %1572 = vrot.lane.b32.xlu0 %v1553_v22, %s2423_s20 }
 0x82a   :  { %1575 = vrot.lane.b32.xlu0 %v1553_v22, %s2409_s11 }
 0x82e   :  { %1578 = vrot.lane.b32.xlu0 %v1553_v22, %s2425_s22 }
 0x832   :  { %1581 = vrot.lane.b32.xlu0 %v1553_v22, %s2429_s26 }
 0x836   :  { %1584 = vrot.lane.b32.xlu0 %v1553_v22, %s2427_s24 }
 0x83a   :  { %1587 = vrot.lane.b32.xlu0 %v1553_v22, %s2431_s30 }
 0x83e   :  { %1590 = vrot.lane.b32.xlu0 %v1553_v22, %s2428_s1 }
 0x842   :  { %1593 = vrot.lane.b32.xlu0 %v1553_v22, %s2432_s8 }
 0x846   :  { %1596 = vrot.lane.b32.xlu0 %v1553_v22, %s2430_s29 }
 0x84a   :  { %1659 = vrot.lane.b32.xlu0 %v3043_v32, %s2432_s8  ;;  %v1666_v32 = vsel %vm3303_vm6, %v1665_v43, %v1624_v26  ;;  %vm3318_vm6 = vcmask 654336  }
 0x84b   :  { %v1667_v63 = vsel %vm3304_vm15, %v1666_v32, %v1627_v27  ;;  %vm3319_vm15 = vmmov %vm3314_vm3 }
 0x84c   :  { %v1668_v55 = vsel %vm3305_vm4, %v1667_v63, %v1630_v28  ;;  %vm3320_vm4 = vmmov %vm3318_vm6 }
 0x84d   :  { %v1669_v58 = vsel %vm3306_vm0, %v1668_v55, %v1633_v30  ;;  %vm3321_vm0 = vcmask 719872  }
 0x84e   :  { %v1670_v59 = vsel %vm3307_vm5, %v1669_v58, %v1636_v36  ;;  %vm3322_vm5 = vmmov %vm3321_vm0 }
 0x84f   :  { %v1671_v1 = vsel %vm3293_vm1, %v1670_v59, %v1639_v38  ;;  %vm3324_vm1 = vcmask 850944  }
 0x850   :  { %v1672_v48 = vsel %vm3310_vm12, %v1671_v1, %v1642_v42 }
 0x851   :  { %v1673_v2 = vsel %vm3314_vm3, %v1672_v48, %v1645_v51 }
 0x852   :  { %v1674_v40 = vsel %vm3318_vm6, %v1673_v2, %v1648_v44 }
 0x884   :  { %v1555_v33 = vpop.permute.xlu0 %1554  ;;  %v1558_v24 = vpop.permute.xlu1 %1557 }
 0x885   :  { %v1599_v31 = vsel %vm3308_vm8, %v1548_v10, %v1555_v33  ;;  %vm3323_vm8 = vcmask 785408  }
 0x886   :  { %v1600_v3 = vsel %vm3309_vm14, %v1599_v31, %v1558_v24  ;;  %vm3325_vm14 = vcmask 916480   ;;  %vm3326_vm12 = vmmov %vm3323_vm8 }
 0x888   :  { %v1561_v37 = vpop.permute.xlu0 %1560  ;;  %v1651_v21 = vpop.permute.xlu1 %1650 }
 0x889   :  { %v1601_v52 = vsel %vm3311_vm7, %v1600_v3, %v1561_v37  ;;  %v1675_v12 = vsel %vm3322_vm5, %v1674_v40, %v1651_v21  ;;  %vm3327_vm7 = vcmask 982016  }
 0x88a   :  { %vm3330_vm3 = vmmov %vm3327_vm7 }
 0x88c   :  { %v1564_v8 = vpop.permute.xlu0 %1563  ;;  %v1654_v41 = vpop.permute.xlu1 %1653 }
 0x88d   :  { %v1602_v5 = vsel %vm3312_vm9, %v1601_v52, %v1564_v8  ;;  %v1676_v16 = vsel %vm3326_vm12, %v1675_v12, %v1654_v41  ;;  %vm3328_vm9 = vmmov %vm3324_vm1 }
 0x890   :  { %v1567_v39 = vpop.permute.xlu0 %1566  ;;  %v1657_v49 = vpop.permute.xlu1 %1656 }
 0x891   :  { %v1603_v0 = vsel %vm3313_vm10, %v1602_v5, %v1567_v39  ;;  %v1677_v10 = vsel %vm3328_vm9, %v1676_v16, %v1657_v49  ;;  %vm3329_vm10 = vmmov %vm3325_vm14 }
 0x894   :  { %v1570_v60 = vpop.permute.xlu0 %1569  ;;  %v1663_v20 = vpop.permute.xlu1 %1662 }
 0x895   :  { %v1604_v47 = vsel %vm3315_vm11, %v1603_v0, %v1570_v60 }
 0x898   :  { %v1573_v61 = vpop.permute.xlu0 %1572 }
 0x899   :  { %v1605_v6 = vsel %vm3316_vm13, %v1604_v47, %v1573_v61 }
 0x89c   :  { %v1576_v62 = vpop.permute.xlu0 %1575 }
 0x89d   :  { %v1606_v45 = vsel %vm3317_vm2, %v1605_v6, %v1576_v62 }
 0x8a0   :  { %v1579_v53 = vpop.permute.xlu0 %1578 }
 0x8a1   :  { %v1607_v54 = vsel %vm3319_vm15, %v1606_v45, %v1579_v53 }
 0x8a4   :  { %v1582_v56 = vpop.permute.xlu0 %1581 }
 0x8a5   :  { %v1608_v7 = vsel %vm3320_vm4, %v1607_v54, %v1582_v56 }
 0x8a8   :  { %v1585_v34 = vpop.permute.xlu0 %1584 }
 0x8a9   :  { %v1609_v57 = vsel %vm3321_vm0, %v1608_v7, %v1585_v34 }
 0x8ac   :  { %v1588_v4 = vpop.permute.xlu0 %1587 }
 0x8ad   :  { %v1610_v46 = vsel %vm3323_vm8, %v1609_v57, %v1588_v4 }
 0x8b0   :  { %v1591_v35 = vpop.permute.xlu0 %1590 }
 0x8b1   :  { %v1611_v13 = vsel %vm3324_vm1, %v1610_v46, %v1591_v35 }
 0x8b4   :  { %v1594_v11 = vpop.permute.xlu0 %1593 }
 0x8b5   :  { %v1612_v14 = vsel %vm3325_vm14, %v1611_v13, %v1594_v11 }
 0x8b8   :  { %v1597_v15 = vpop.permute.xlu0 %1596 }
 0x8b9   :  { %v1613_v17 = vsel %vm3327_vm7, %v1612_v14, %v1597_v15 }
 0x8ba   :  { %v1683_v19 = vrot.slane %v1613_v17, %v2762_v9 }
 0x8bc   :  { %v1660_v22 = vpop.permute.xlu0 %1659  ;;  %v1684_v27 = vmul.f32 %v1683_v19, %v3083_v50  ;;  %v1685_v30 = vmul.f32 %v1683_v19, %v3086_v18  ;;  %v1686_v33 = vmul.f32 %v1683_v19, %v3089_v23  ;;  %v1687_v36 = vmul.f32 %v1683_v19, %v3092_v29 }
 0x8bd   :  { %v1678_v25 = vsel %vm3329_vm10, %v1677_v10, %v1660_v22 }
 0x8be   :  { %v1679_v26 = vsel %vm3330_vm3, %v1678_v25, %v1663_v20 }
 0x8bf   :  { %v1691_v28 = vrot.slane %v1679_v26, %v2762_v9 }
 0x8c1   :  { %v1692_v37 = vadd.f32 %v1691_v28, %v1684_v27  ;;  %v1693_v8 = vadd.f32 %v1691_v28, %v1685_v30  ;;  %v1694_v38 = vadd.f32 %v1691_v28, %v1686_v33  ;;  %v1695_v39 = vadd.f32 %v1691_v28, %v1687_v36 }
 0x8c3   :  { %v1696_v42 = vmax.f32 %v1692_v37, 0.0  ;;  %v1697_v60 = vmax.f32 %v1693_v8, 0.0  ;;  %v1698_v43 = vmax.f32 %v1694_v38, 0.0  ;;  %v1699_v61 = vmax.f32 %v1695_v39, 0.0 }
 0x8c5   :  { %v1867_v51 = vpack.c.bf16 %v1697_v60, %v1696_v42  ;;  %v1872_v50 = vpack.c.bf16 %v1699_v61, %v1698_v43 }
 0x8c7   :  { %1868 = vst [vmem:[#allocation8] sm:$0xff] %v1867_v51   ;;  %1874 = vst [vmem:[#allocation8 + $0x8] sm:$0xff] %v1872_v50  }
 0x8c8   :  { %2391 = shalt.err (!%p2388_p0)
}
 0x8c9   :  { %s2392_s0 = scalar_lea.hbm %s3190_s7, 256 }
 0x8ca   :  { %p2393_p1 = scmp.ne.s32.totalorder %s3190_s7, %s2392_s0  ;;  %p2396_p2 = scmp.lt.u32.totalorder %s2392_s0, %s3190_s7 }
 0x8cc   :  { %p2398_p3 = pnand %p2396_p2, %p2393_p1 }
 0x8ce   :  { %2401 = shalt.err (!%p2398_p3)
}
 0x8cf   :  { %1731 = dma.vmem_to_hbm [thread:$0]  %s1726_s25, 256, %s3190_s7, [#allocation4], %s2409_s11, %s2409_s11, %s2410_s12  }
 0x8d0   :  { %2406 = dma.done.wait [#allocation4], 256  }
 0x8d1   :  { %2407 = vsyncadd [#allocation4], 4294967040 }
 0x8d2   :  { %1735 = vsyncpa [#allocation3], 1 }
 0x8d3   :  { %1736 = vsyncpa [#allocation6], 1 }
 0x8d4   :  { %1737 = vsyncpa [#allocation4], 1 }

</bundles_post_ra>
